<compile_context>
chip_gen: v7x
topology: tpu7x:2x2x1
jax: 0.10.0
libtpu: 0.0.40
codegen_flags: <defaults>
</compile_context>

<pallas_src>
from functools import partial

import jax
import jax.numpy as jnp
from jax.experimental import pallas as pl
from jax.experimental.pallas import tpu as pltpu


def _fringe_kernel(wh_ref, ww_ref, bh_ref, bw_ref, x_ref, o_ref, *, ct, ksize):
    """Fused depthwise (K,1) + (1,K) conv + bias + add on a (1, ct, H, W) block.

    wh_ref, ww_ref: (C*K,) f32 SMEM (scalar-prefetched per-channel taps)
    bh_ref, bw_ref: (C,)   f32 SMEM (scalar-prefetched per-channel biases)
    x_ref, o_ref  : (1, ct, H, W) VMEM blocks
    """
    pad = ksize // 2
    H, W = o_ref.shape[2], o_ref.shape[3]
    c0 = pl.program_id(1) * ct

    # Static border masks per non-center tap, hoisted out of all loops.
    # valid source index: 0 <= h + d < H  (d = k - pad), same for width.
    row = jax.lax.broadcasted_iota(jnp.int32, (H, W), 0)
    col = jax.lax.broadcasted_iota(jnp.int32, (H, W), 1)
    masks_h, masks_w = {}, {}
    for k in range(ksize):
        d = k - pad
        if d == 0:
            continue
        masks_h[k] = (row >= -d) & (row < H - d)
        masks_w[k] = (col >= -d) & (col < W - d)

    def channel_body(j, carry):
        c = c0 + j
        x32 = x_ref[0, j].astype(jnp.float32)
        # Two independent accumulator chains (height / width) for VPU ILP;
        # start each with its center (unshifted, unmasked) tap.
        acc_h = wh_ref[c * ksize + pad] * x32
        acc_w = ww_ref[c * ksize + pad] * x32
        for k in range(ksize):                        # statically unrolled taps
            d = k - pad
            if d == 0:
                continue
            # height tap: out[h,w] += wh[c,k] * x[h+d, w]   (roll on sublanes)
            xh = pltpu.roll(x32, (pad - k) % H, 0)
            acc_h = acc_h + wh_ref[c * ksize + k] * jnp.where(masks_h[k], xh, 0.0)
            # width  tap: out[h,w] += ww[c,k] * x[h, w+d]   (roll on lanes)
            xw = pltpu.roll(x32, (pad - k) % W, 1)
            acc_w = acc_w + ww_ref[c * ksize + k] * jnp.where(masks_w[k], xw, 0.0)
        bias = bh_ref[c] + bw_ref[c]
        o_ref[0, j] = (acc_h + acc_w + bias).astype(o_ref.dtype)
        return carry

    if ct <= 16:                                      # small: full static unroll
        for j in range(ct):
            channel_body(j, 0)
    else:                                             # large: bound live ranges
        jax.lax.fori_loop(0, ct, channel_body, 0)


def _pick_channel_tile(C, H, W, itemsize, budget_bytes=16 << 20):
    """Largest divisor of C whose double-buffered in+out blocks stay within
    ~budget_bytes of live VMEM (safe even on v7x's smaller VMEM)."""
    per_chan = 4 * itemsize * H * W          # 2x-buffered input + output plane
    ct = max(1, min(C, budget_bytes // max(per_chan, 1)))
    while C % ct:
        ct -= 1
    return int(ct)


def td_fringe_convolution(x, wh, bh, ww, bw, *, ksize=5):
    """x: (B, C, H, W); wh/ww: (C, K) depthwise taps; bh/bw: (C,) biases."""
    B, C, H, W = x.shape
    itemsize = jnp.dtype(x.dtype).itemsize
    ct = _pick_channel_tile(C, H, W, itemsize)
    block_bytes = ct * H * W * itemsize
    vmem_limit = int(min(max(32 << 20, 6 * block_bytes), 64 << 20))
    kernel = partial(_fringe_kernel, ct=ct, ksize=ksize)

    grid_spec = pltpu.PrefetchScalarGridSpec(
        num_scalar_prefetch=4,                      # taps + biases -> SMEM once
        grid=(B, C // ct),
        in_specs=[pl.BlockSpec((1, ct, H, W), lambda b, c, *_: (b, c, 0, 0))],
        out_specs=pl.BlockSpec((1, ct, H, W), lambda b, c, *_: (b, c, 0, 0)),
        scratch_shapes=[],
    )
    return pl.pallas_call(
        kernel,
        out_shape=jax.ShapeDtypeStruct((B, C, H, W), x.dtype),
        grid_spec=grid_spec,
        compiler_params=pltpu.CompilerParams(
            dimension_semantics=("parallel", "parallel"),
            vmem_limit_bytes=vmem_limit),
    )(
        wh.reshape(-1).astype(jnp.float32),   # (C*K,) height taps
        ww.reshape(-1).astype(jnp.float32),   # (C*K,) width  taps
        bh.reshape(-1).astype(jnp.float32),   # (C,)
        bw.reshape(-1).astype(jnp.float32),   # (C,)
        x,
    )


def _reference(x, wh, bh, ww, bw, ksize=5):
    """Plain-JAX reference matching the PyTorch module (cross-correlation)."""
    pad = ksize // 2
    B, C, H, W = x.shape
    xp = jnp.pad(x.astype(jnp.float32),
                 ((0, 0), (0, 0), (pad, pad), (pad, pad)))
    acc = jnp.broadcast_to((bh + bw)[None, :, None, None],
                           (B, C, H, W)).astype(jnp.float32)
    for k in range(ksize):
        acc = acc + wh[None, :, k, None, None] * xp[:, :, k:k + H, pad:pad + W]
        acc = acc + ww[None, :, k, None, None] * xp[:, :, pad:pad + H, k:k + W]
    return acc


if __name__ == "__main__":
    key = jax.random.PRNGKey(0)
    kx, kwh, kbh, kww, kbw = jax.random.split(key, 5)
    B, C, H, W, K = 2, 4, 16, 16, 5

    x = jax.random.normal(kx, (B, C, H, W), jnp.float32)
    wh = 0.2 * jax.random.normal(kwh, (C, K), jnp.float32)   # Conv2d weight (C,1,K,1) -> (C,K)
    bh = 0.1 * jax.random.normal(kbh, (C,), jnp.float32)
    ww = 0.2 * jax.random.normal(kww, (C, K), jnp.float32)   # Conv2d weight (C,1,1,K) -> (C,K)
    bw = 0.1 * jax.random.normal(kbw, (C,), jnp.float32)

    fwd = jax.jit(partial(td_fringe_convolution, ksize=K))
    out = fwd(x, wh, bh, ww, bw)
    jax.block_until_ready(out)

    ref = _reference(x, wh, bh, ww, bw, K)
    assert out.shape == (B, C, H, W)
    assert bool(jnp.all(jnp.isfinite(out)))
    assert bool(jnp.allclose(out, ref, rtol=1e-4, atol=1e-4)), \
        float(jnp.max(jnp.abs(out - ref)))
    print("KERNEL_OK")
</pallas_src>

<mosaic_0001>
module attributes {stable_mosaic.version = 11 : i64} {
  func.func @_fringe_kernel(%arg0: i32, %arg1: i32, %arg2: memref<20xf32, #tpu.memory_space<smem>>, %arg3: memref<20xf32, #tpu.memory_space<smem>>, %arg4: memref<4xf32, #tpu.memory_space<smem>>, %arg5: memref<4xf32, #tpu.memory_space<smem>>, %arg6: memref<1x4x16x16xf32, #tpu.memory_space<vmem>>, %arg7: memref<1x4x16x16xf32, #tpu.memory_space<vmem>>) attributes {dimension_semantics = [#tpu.dimension_semantics<parallel>, #tpu.dimension_semantics<parallel>], iteration_bounds = array<i64: 2, 1>, scalar_prefetch = 4 : i64, scratch_operands = 0 : i64, tpu.core_type = #tpu.core_type<tc>, window_params = [{transform_indices = @transform_0, window_bounds = array<i64: 1, 4, 16, 16>}, {transform_indices = @transform_1, window_bounds = array<i64: 1, 4, 16, 16>}]} {
    %c4_i32 = arith.constant 4 : i32
    %0 = arith.muli %arg1, %c4_i32 : i32
    %1 = tpu.iota {dimensions = array<i32: 0>} : vector<16x16xi32>
    %2 = tpu.iota {dimensions = array<i32: 1>} : vector<16x16xi32>
    %c2_i32 = arith.constant 2 : i32
    %3 = vector.broadcast %c2_i32 : i32 to vector<16x16xi32>
    %4 = arith.cmpi sge, %1, %3 : vector<16x16xi32>
    %c18_i32 = arith.constant 18 : i32
    %5 = vector.broadcast %c18_i32 : i32 to vector<16x16xi32>
    %6 = arith.cmpi slt, %1, %5 : vector<16x16xi32>
    %7 = arith.andi %4, %6 : vector<16x16xi1>
    %c2_i32_0 = arith.constant 2 : i32
    %8 = vector.broadcast %c2_i32_0 : i32 to vector<16x16xi32>
    %9 = arith.cmpi sge, %2, %8 : vector<16x16xi32>
    %c18_i32_1 = arith.constant 18 : i32
    %10 = vector.broadcast %c18_i32_1 : i32 to vector<16x16xi32>
    %11 = arith.cmpi slt, %2, %10 : vector<16x16xi32>
    %12 = arith.andi %9, %11 : vector<16x16xi1>
    %c1_i32 = arith.constant 1 : i32
    %13 = vector.broadcast %c1_i32 : i32 to vector<16x16xi32>
    %14 = arith.cmpi sge, %1, %13 : vector<16x16xi32>
    %c17_i32 = arith.constant 17 : i32
    %15 = vector.broadcast %c17_i32 : i32 to vector<16x16xi32>
    %16 = arith.cmpi slt, %1, %15 : vector<16x16xi32>
    %17 = arith.andi %14, %16 : vector<16x16xi1>
    %c1_i32_2 = arith.constant 1 : i32
    %18 = vector.broadcast %c1_i32_2 : i32 to vector<16x16xi32>
    %19 = arith.cmpi sge, %2, %18 : vector<16x16xi32>
    %c17_i32_3 = arith.constant 17 : i32
    %20 = vector.broadcast %c17_i32_3 : i32 to vector<16x16xi32>
    %21 = arith.cmpi slt, %2, %20 : vector<16x16xi32>
    %22 = arith.andi %19, %21 : vector<16x16xi1>
    %c-1_i32 = arith.constant -1 : i32
    %23 = vector.broadcast %c-1_i32 : i32 to vector<16x16xi32>
    %24 = arith.cmpi sge, %1, %23 : vector<16x16xi32>
    %c15_i32 = arith.constant 15 : i32
    %25 = vector.broadcast %c15_i32 : i32 to vector<16x16xi32>
    %26 = arith.cmpi slt, %1, %25 : vector<16x16xi32>
    %27 = arith.andi %24, %26 : vector<16x16xi1>
    %c-1_i32_4 = arith.constant -1 : i32
    %28 = vector.broadcast %c-1_i32_4 : i32 to vector<16x16xi32>
    %29 = arith.cmpi sge, %2, %28 : vector<16x16xi32>
    %c15_i32_5 = arith.constant 15 : i32
    %30 = vector.broadcast %c15_i32_5 : i32 to vector<16x16xi32>
    %31 = arith.cmpi slt, %2, %30 : vector<16x16xi32>
    %32 = arith.andi %29, %31 : vector<16x16xi1>
    %c-2_i32 = arith.constant -2 : i32
    %33 = vector.broadcast %c-2_i32 : i32 to vector<16x16xi32>
    %34 = arith.cmpi sge, %1, %33 : vector<16x16xi32>
    %c14_i32 = arith.constant 14 : i32
    %35 = vector.broadcast %c14_i32 : i32 to vector<16x16xi32>
    %36 = arith.cmpi slt, %1, %35 : vector<16x16xi32>
    %37 = arith.andi %34, %36 : vector<16x16xi1>
    %c-2_i32_6 = arith.constant -2 : i32
    %38 = vector.broadcast %c-2_i32_6 : i32 to vector<16x16xi32>
    %39 = arith.cmpi sge, %2, %38 : vector<16x16xi32>
    %c14_i32_7 = arith.constant 14 : i32
    %40 = vector.broadcast %c14_i32_7 : i32 to vector<16x16xi32>
    %41 = arith.cmpi slt, %2, %40 : vector<16x16xi32>
    %42 = arith.andi %39, %41 : vector<16x16xi1>
    %c0_i32 = arith.constant 0 : i32
    %43 = arith.addi %0, %c0_i32 : i32
    %c0 = arith.constant 0 : index
    %c0_8 = arith.constant 0 : index
    %c0_9 = arith.constant 0 : index
    %c0_10 = arith.constant 0 : index
    %44 = vector.load %arg6[%c0, %c0_8, %c0_9, %c0_10] : memref<1x4x16x16xf32, #tpu.memory_space<vmem>>, vector<1x1x16x16xf32>
    %45 = vector.shape_cast %44 : vector<1x1x16x16xf32> to vector<16x16xf32>
    %c5_i32 = arith.constant 5 : i32
    %46 = arith.muli %43, %c5_i32 : i32
    %c2_i32_11 = arith.constant 2 : i32
    %47 = arith.addi %46, %c2_i32_11 : i32
    %48 = arith.index_cast %47 : i32 to index
    %49 = memref.load %arg2[%48] : memref<20xf32, #tpu.memory_space<smem>>
    %50 = vector.broadcast %49 : f32 to vector<16x16xf32>
    %51 = arith.mulf %50, %45 : vector<16x16xf32>
    %c5_i32_12 = arith.constant 5 : i32
    %52 = arith.muli %43, %c5_i32_12 : i32
    %c2_i32_13 = arith.constant 2 : i32
    %53 = arith.addi %52, %c2_i32_13 : i32
    %54 = arith.index_cast %53 : i32 to index
    %55 = memref.load %arg3[%54] : memref<20xf32, #tpu.memory_space<smem>>
    %56 = vector.broadcast %55 : f32 to vector<16x16xf32>
    %57 = arith.mulf %56, %45 : vector<16x16xf32>
    %c2_i32_14 = arith.constant 2 : i32
    %58 = tpu.dynamic_rotate %45 by %c2_i32_14 dim 0 : vector<16x16xf32>, i32 -> vector<16x16xf32>
    %c5_i32_15 = arith.constant 5 : i32
    %59 = arith.muli %43, %c5_i32_15 : i32
    %c0_i32_16 = arith.constant 0 : i32
    %60 = arith.addi %59, %c0_i32_16 : i32
    %61 = arith.index_cast %60 : i32 to index
    %62 = memref.load %arg2[%61] : memref<20xf32, #tpu.memory_space<smem>>
    %cst = arith.constant 0.000000e+00 : f32
    %63 = vector.broadcast %cst : f32 to vector<16x16xf32>
    %64 = arith.select %7, %58, %63 : vector<16x16xi1>, vector<16x16xf32>
    %65 = vector.broadcast %62 : f32 to vector<16x16xf32>
    %66 = arith.mulf %65, %64 : vector<16x16xf32>
    %67 = arith.addf %51, %66 : vector<16x16xf32>
    %c2_i32_17 = arith.constant 2 : i32
    %68 = tpu.dynamic_rotate %45 by %c2_i32_17 dim 1 : vector<16x16xf32>, i32 -> vector<16x16xf32>
    %c5_i32_18 = arith.constant 5 : i32
    %69 = arith.muli %43, %c5_i32_18 : i32
    %c0_i32_19 = arith.constant 0 : i32
    %70 = arith.addi %69, %c0_i32_19 : i32
    %71 = arith.index_cast %70 : i32 to index
    %72 = memref.load %arg3[%71] : memref<20xf32, #tpu.memory_space<smem>>
    %cst_20 = arith.constant 0.000000e+00 : f32
    %73 = vector.broadcast %cst_20 : f32 to vector<16x16xf32>
    %74 = arith.select %12, %68, %73 : vector<16x16xi1>, vector<16x16xf32>
    %75 = vector.broadcast %72 : f32 to vector<16x16xf32>
    %76 = arith.mulf %75, %74 : vector<16x16xf32>
    %77 = arith.addf %57, %76 : vector<16x16xf32>
    %c1_i32_21 = arith.constant 1 : i32
    %78 = tpu.dynamic_rotate %45 by %c1_i32_21 dim 0 : vector<16x16xf32>, i32 -> vector<16x16xf32>
    %c5_i32_22 = arith.constant 5 : i32
    %79 = arith.muli %43, %c5_i32_22 : i32
    %c1_i32_23 = arith.constant 1 : i32
    %80 = arith.addi %79, %c1_i32_23 : i32
    %81 = arith.index_cast %80 : i32 to index
    %82 = memref.load %arg2[%81] : memref<20xf32, #tpu.memory_space<smem>>
    %cst_24 = arith.constant 0.000000e+00 : f32
    %83 = vector.broadcast %cst_24 : f32 to vector<16x16xf32>
    %84 = arith.select %17, %78, %83 : vector<16x16xi1>, vector<16x16xf32>
    %85 = vector.broadcast %82 : f32 to vector<16x16xf32>
    %86 = arith.mulf %85, %84 : vector<16x16xf32>
    %87 = arith.addf %67, %86 : vector<16x16xf32>
    %c1_i32_25 = arith.constant 1 : i32
    %88 = tpu.dynamic_rotate %45 by %c1_i32_25 dim 1 : vector<16x16xf32>, i32 -> vector<16x16xf32>
    %c5_i32_26 = arith.constant 5 : i32
    %89 = arith.muli %43, %c5_i32_26 : i32
    %c1_i32_27 = arith.constant 1 : i32
    %90 = arith.addi %89, %c1_i32_27 : i32
    %91 = arith.index_cast %90 : i32 to index
    %92 = memref.load %arg3[%91] : memref<20xf32, #tpu.memory_space<smem>>
    %cst_28 = arith.constant 0.000000e+00 : f32
    %93 = vector.broadcast %cst_28 : f32 to vector<16x16xf32>
    %94 = arith.select %22, %88, %93 : vector<16x16xi1>, vector<16x16xf32>
    %95 = vector.broadcast %92 : f32 to vector<16x16xf32>
    %96 = arith.mulf %95, %94 : vector<16x16xf32>
    %97 = arith.addf %77, %96 : vector<16x16xf32>
    %c15_i32_29 = arith.constant 15 : i32
    %98 = tpu.dynamic_rotate %45 by %c15_i32_29 dim 0 : vector<16x16xf32>, i32 -> vector<16x16xf32>
    %c5_i32_30 = arith.constant 5 : i32
    %99 = arith.muli %43, %c5_i32_30 : i32
    %c3_i32 = arith.constant 3 : i32
    %100 = arith.addi %99, %c3_i32 : i32
    %101 = arith.index_cast %100 : i32 to index
    %102 = memref.load %arg2[%101] : memref<20xf32, #tpu.memory_space<smem>>
    %cst_31 = arith.constant 0.000000e+00 : f32
    %103 = vector.broadcast %cst_31 : f32 to vector<16x16xf32>
    %104 = arith.select %27, %98, %103 : vector<16x16xi1>, vector<16x16xf32>
    %105 = vector.broadcast %102 : f32 to vector<16x16xf32>
    %106 = arith.mulf %105, %104 : vector<16x16xf32>
    %107 = arith.addf %87, %106 : vector<16x16xf32>
    %c15_i32_32 = arith.constant 15 : i32
    %108 = tpu.dynamic_rotate %45 by %c15_i32_32 dim 1 : vector<16x16xf32>, i32 -> vector<16x16xf32>
    %c5_i32_33 = arith.constant 5 : i32
    %109 = arith.muli %43, %c5_i32_33 : i32
    %c3_i32_34 = arith.constant 3 : i32
    %110 = arith.addi %109, %c3_i32_34 : i32
    %111 = arith.index_cast %110 : i32 to index
    %112 = memref.load %arg3[%111] : memref<20xf32, #tpu.memory_space<smem>>
    %cst_35 = arith.constant 0.000000e+00 : f32
    %113 = vector.broadcast %cst_35 : f32 to vector<16x16xf32>
    %114 = arith.select %32, %108, %113 : vector<16x16xi1>, vector<16x16xf32>
    %115 = vector.broadcast %112 : f32 to vector<16x16xf32>
    %116 = arith.mulf %115, %114 : vector<16x16xf32>
    %117 = arith.addf %97, %116 : vector<16x16xf32>
    %c14_i32_36 = arith.constant 14 : i32
    %118 = tpu.dynamic_rotate %45 by %c14_i32_36 dim 0 : vector<16x16xf32>, i32 -> vector<16x16xf32>
    %c5_i32_37 = arith.constant 5 : i32
    %119 = arith.muli %43, %c5_i32_37 : i32
    %c4_i32_38 = arith.constant 4 : i32
    %120 = arith.addi %119, %c4_i32_38 : i32
    %121 = arith.index_cast %120 : i32 to index
    %122 = memref.load %arg2[%121] : memref<20xf32, #tpu.memory_space<smem>>
    %cst_39 = arith.constant 0.000000e+00 : f32
    %123 = vector.broadcast %cst_39 : f32 to vector<16x16xf32>
    %124 = arith.select %37, %118, %123 : vector<16x16xi1>, vector<16x16xf32>
    %125 = vector.broadcast %122 : f32 to vector<16x16xf32>
    %126 = arith.mulf %125, %124 : vector<16x16xf32>
    %127 = arith.addf %107, %126 : vector<16x16xf32>
    %c14_i32_40 = arith.constant 14 : i32
    %128 = tpu.dynamic_rotate %45 by %c14_i32_40 dim 1 : vector<16x16xf32>, i32 -> vector<16x16xf32>
    %c5_i32_41 = arith.constant 5 : i32
    %129 = arith.muli %43, %c5_i32_41 : i32
    %c4_i32_42 = arith.constant 4 : i32
    %130 = arith.addi %129, %c4_i32_42 : i32
    %131 = arith.index_cast %130 : i32 to index
    %132 = memref.load %arg3[%131] : memref<20xf32, #tpu.memory_space<smem>>
    %cst_43 = arith.constant 0.000000e+00 : f32
    %133 = vector.broadcast %cst_43 : f32 to vector<16x16xf32>
    %134 = arith.select %42, %128, %133 : vector<16x16xi1>, vector<16x16xf32>
    %135 = vector.broadcast %132 : f32 to vector<16x16xf32>
    %136 = arith.mulf %135, %134 : vector<16x16xf32>
    %137 = arith.addf %117, %136 : vector<16x16xf32>
    %138 = arith.index_cast %43 : i32 to index
    %139 = memref.load %arg4[%138] : memref<4xf32, #tpu.memory_space<smem>>
    %140 = arith.index_cast %43 : i32 to index
    %141 = memref.load %arg5[%140] : memref<4xf32, #tpu.memory_space<smem>>
    %142 = arith.addf %139, %141 : f32
    %143 = arith.addf %127, %137 : vector<16x16xf32>
    %144 = vector.broadcast %142 : f32 to vector<16x16xf32>
    %145 = arith.addf %143, %144 : vector<16x16xf32>
    %c0_44 = arith.constant 0 : index
    %c0_45 = arith.constant 0 : index
    %c0_46 = arith.constant 0 : index
    %c0_47 = arith.constant 0 : index
    %146 = vector.load %arg7[%c0_44, %c0_45, %c0_46, %c0_47] : memref<1x4x16x16xf32, #tpu.memory_space<vmem>>, vector<1x1x16x16xf32>
    %147 = vector.shape_cast %146 : vector<1x1x16x16xf32> to vector<16x16xf32>
    %148 = vector.shape_cast %145 : vector<16x16xf32> to vector<1x1x16x16xf32>
    tpu.vector_store %arg7[%c0_44, %c0_45, %c0_46, %c0_47], %148 {strides = array<i32>} : memref<1x4x16x16xf32, #tpu.memory_space<vmem>>, vector<1x1x16x16xf32>,
    %c1_i32_48 = arith.constant 1 : i32
    %149 = arith.addi %0, %c1_i32_48 : i32
    %c0_49 = arith.constant 0 : index
    %c1 = arith.constant 1 : index
    %c0_50 = arith.constant 0 : index
    %c0_51 = arith.constant 0 : index
    %150 = vector.load %arg6[%c0_49, %c1, %c0_50, %c0_51] : memref<1x4x16x16xf32, #tpu.memory_space<vmem>>, vector<1x1x16x16xf32>
    %151 = vector.shape_cast %150 : vector<1x1x16x16xf32> to vector<16x16xf32>
    %c5_i32_52 = arith.constant 5 : i32
    %152 = arith.muli %149, %c5_i32_52 : i32
    %c2_i32_53 = arith.constant 2 : i32
    %153 = arith.addi %152, %c2_i32_53 : i32
    %154 = arith.index_cast %153 : i32 to index
    %155 = memref.load %arg2[%154] : memref<20xf32, #tpu.memory_space<smem>>
    %156 = vector.broadcast %155 : f32 to vector<16x16xf32>
    %157 = arith.mulf %156, %151 : vector<16x16xf32>
    %c5_i32_54 = arith.constant 5 : i32
    %158 = arith.muli %149, %c5_i32_54 : i32
    %c2_i32_55 = arith.constant 2 : i32
    %159 = arith.addi %158, %c2_i32_55 : i32
    %160 = arith.index_cast %159 : i32 to index
    %161 = memref.load %arg3[%160] : memref<20xf32, #tpu.memory_space<smem>>
    %162 = vector.broadcast %161 : f32 to vector<16x16xf32>
    %163 = arith.mulf %162, %151 : vector<16x16xf32>
    %c2_i32_56 = arith.constant 2 : i32
    %164 = tpu.dynamic_rotate %151 by %c2_i32_56 dim 0 : vector<16x16xf32>, i32 -> vector<16x16xf32>
    %c5_i32_57 = arith.constant 5 : i32
    %165 = arith.muli %149, %c5_i32_57 : i32
    %c0_i32_58 = arith.constant 0 : i32
    %166 = arith.addi %165, %c0_i32_58 : i32
    %167 = arith.index_cast %166 : i32 to index
    %168 = memref.load %arg2[%167] : memref<20xf32, #tpu.memory_space<smem>>
    %cst_59 = arith.constant 0.000000e+00 : f32
    %169 = vector.broadcast %cst_59 : f32 to vector<16x16xf32>
    %170 = arith.select %7, %164, %169 : vector<16x16xi1>, vector<16x16xf32>
    %171 = vector.broadcast %168 : f32 to vector<16x16xf32>
    %172 = arith.mulf %171, %170 : vector<16x16xf32>
    %173 = arith.addf %157, %172 : vector<16x16xf32>
    %c2_i32_60 = arith.constant 2 : i32
    %174 = tpu.dynamic_rotate %151 by %c2_i32_60 dim 1 : vector<16x16xf32>, i32 -> vector<16x16xf32>
    %c5_i32_61 = arith.constant 5 : i32
    %175 = arith.muli %149, %c5_i32_61 : i32
    %c0_i32_62 = arith.constant 0 : i32
    %176 = arith.addi %175, %c0_i32_62 : i32
    %177 = arith.index_cast %176 : i32 to index
    %178 = memref.load %arg3[%177] : memref<20xf32, #tpu.memory_space<smem>>
    %cst_63 = arith.constant 0.000000e+00 : f32
    %179 = vector.broadcast %cst_63 : f32 to vector<16x16xf32>
    %180 = arith.select %12, %174, %179 : vector<16x16xi1>, vector<16x16xf32>
    %181 = vector.broadcast %178 : f32 to vector<16x16xf32>
    %182 = arith.mulf %181, %180 : vector<16x16xf32>
    %183 = arith.addf %163, %182 : vector<16x16xf32>
    %c1_i32_64 = arith.constant 1 : i32
    %184 = tpu.dynamic_rotate %151 by %c1_i32_64 dim 0 : vector<16x16xf32>, i32 -> vector<16x16xf32>
    %c5_i32_65 = arith.constant 5 : i32
    %185 = arith.muli %149, %c5_i32_65 : i32
    %c1_i32_66 = arith.constant 1 : i32
    %186 = arith.addi %185, %c1_i32_66 : i32
    %187 = arith.index_cast %186 : i32 to index
    %188 = memref.load %arg2[%187] : memref<20xf32, #tpu.memory_space<smem>>
    %cst_67 = arith.constant 0.000000e+00 : f32
    %189 = vector.broadcast %cst_67 : f32 to vector<16x16xf32>
    %190 = arith.select %17, %184, %189 : vector<16x16xi1>, vector<16x16xf32>
    %191 = vector.broadcast %188 : f32 to vector<16x16xf32>
    %192 = arith.mulf %191, %190 : vector<16x16xf32>
    %193 = arith.addf %173, %192 : vector<16x16xf32>
    %c1_i32_68 = arith.constant 1 : i32
    %194 = tpu.dynamic_rotate %151 by %c1_i32_68 dim 1 : vector<16x16xf32>, i32 -> vector<16x16xf32>
    %c5_i32_69 = arith.constant 5 : i32
    %195 = arith.muli %149, %c5_i32_69 : i32
    %c1_i32_70 = arith.constant 1 : i32
    %196 = arith.addi %195, %c1_i32_70 : i32
    %197 = arith.index_cast %196 : i32 to index
    %198 = memref.load %arg3[%197] : memref<20xf32, #tpu.memory_space<smem>>
    %cst_71 = arith.constant 0.000000e+00 : f32
    %199 = vector.broadcast %cst_71 : f32 to vector<16x16xf32>
    %200 = arith.select %22, %194, %199 : vector<16x16xi1>, vector<16x16xf32>
    %201 = vector.broadcast %198 : f32 to vector<16x16xf32>
    %202 = arith.mulf %201, %200 : vector<16x16xf32>
    %203 = arith.addf %183, %202 : vector<16x16xf32>
    %c15_i32_72 = arith.constant 15 : i32
    %204 = tpu.dynamic_rotate %151 by %c15_i32_72 dim 0 : vector<16x16xf32>, i32 -> vector<16x16xf32>
    %c5_i32_73 = arith.constant 5 : i32
    %205 = arith.muli %149, %c5_i32_73 : i32
    %c3_i32_74 = arith.constant 3 : i32
    %206 = arith.addi %205, %c3_i32_74 : i32
    %207 = arith.index_cast %206 : i32 to index
    %208 = memref.load %arg2[%207] : memref<20xf32, #tpu.memory_space<smem>>
    %cst_75 = arith.constant 0.000000e+00 : f32
    %209 = vector.broadcast %cst_75 : f32 to vector<16x16xf32>
    %210 = arith.select %27, %204, %209 : vector<16x16xi1>, vector<16x16xf32>
    %211 = vector.broadcast %208 : f32 to vector<16x16xf32>
    %212 = arith.mulf %211, %210 : vector<16x16xf32>
    %213 = arith.addf %193, %212 : vector<16x16xf32>
    %c15_i32_76 = arith.constant 15 : i32
    %214 = tpu.dynamic_rotate %151 by %c15_i32_76 dim 1 : vector<16x16xf32>, i32 -> vector<16x16xf32>
    %c5_i32_77 = arith.constant 5 : i32
    %215 = arith.muli %149, %c5_i32_77 : i32
    %c3_i32_78 = arith.constant 3 : i32
    %216 = arith.addi %215, %c3_i32_78 : i32
    %217 = arith.index_cast %216 : i32 to index
    %218 = memref.load %arg3[%217] : memref<20xf32, #tpu.memory_space<smem>>
    %cst_79 = arith.constant 0.000000e+00 : f32
    %219 = vector.broadcast %cst_79 : f32 to vector<16x16xf32>
    %220 = arith.select %32, %214, %219 : vector<16x16xi1>, vector<16x16xf32>
    %221 = vector.broadcast %218 : f32 to vector<16x16xf32>
    %222 = arith.mulf %221, %220 : vector<16x16xf32>
    %223 = arith.addf %203, %222 : vector<16x16xf32>
    %c14_i32_80 = arith.constant 14 : i32
    %224 = tpu.dynamic_rotate %151 by %c14_i32_80 dim 0 : vector<16x16xf32>, i32 -> vector<16x16xf32>
    %c5_i32_81 = arith.constant 5 : i32
    %225 = arith.muli %149, %c5_i32_81 : i32
    %c4_i32_82 = arith.constant 4 : i32
    %226 = arith.addi %225, %c4_i32_82 : i32
    %227 = arith.index_cast %226 : i32 to index
    %228 = memref.load %arg2[%227] : memref<20xf32, #tpu.memory_space<smem>>
    %cst_83 = arith.constant 0.000000e+00 : f32
    %229 = vector.broadcast %cst_83 : f32 to vector<16x16xf32>
    %230 = arith.select %37, %224, %229 : vector<16x16xi1>, vector<16x16xf32>
    %231 = vector.broadcast %228 : f32 to vector<16x16xf32>
    %232 = arith.mulf %231, %230 : vector<16x16xf32>
    %233 = arith.addf %213, %232 : vector<16x16xf32>
    %c14_i32_84 = arith.constant 14 : i32
    %234 = tpu.dynamic_rotate %151 by %c14_i32_84 dim 1 : vector<16x16xf32>, i32 -> vector<16x16xf32>
    %c5_i32_85 = arith.constant 5 : i32
    %235 = arith.muli %149, %c5_i32_85 : i32
    %c4_i32_86 = arith.constant 4 : i32
    %236 = arith.addi %235, %c4_i32_86 : i32
    %237 = arith.index_cast %236 : i32 to index
    %238 = memref.load %arg3[%237] : memref<20xf32, #tpu.memory_space<smem>>
    %cst_87 = arith.constant 0.000000e+00 : f32
    %239 = vector.broadcast %cst_87 : f32 to vector<16x16xf32>
    %240 = arith.select %42, %234, %239 : vector<16x16xi1>, vector<16x16xf32>
    %241 = vector.broadcast %238 : f32 to vector<16x16xf32>
    %242 = arith.mulf %241, %240 : vector<16x16xf32>
    %243 = arith.addf %223, %242 : vector<16x16xf32>
    %244 = arith.index_cast %149 : i32 to index
    %245 = memref.load %arg4[%244] : memref<4xf32, #tpu.memory_space<smem>>
    %246 = arith.index_cast %149 : i32 to index
    %247 = memref.load %arg5[%246] : memref<4xf32, #tpu.memory_space<smem>>
    %248 = arith.addf %245, %247 : f32
    %249 = arith.addf %233, %243 : vector<16x16xf32>
    %250 = vector.broadcast %248 : f32 to vector<16x16xf32>
    %251 = arith.addf %249, %250 : vector<16x16xf32>
    %c0_88 = arith.constant 0 : index
    %c1_89 = arith.constant 1 : index
    %c0_90 = arith.constant 0 : index
    %c0_91 = arith.constant 0 : index
    %252 = vector.load %arg7[%c0_88, %c1_89, %c0_90, %c0_91] : memref<1x4x16x16xf32, #tpu.memory_space<vmem>>, vector<1x1x16x16xf32>
    %253 = vector.shape_cast %252 : vector<1x1x16x16xf32> to vector<16x16xf32>
    %254 = vector.shape_cast %251 : vector<16x16xf32> to vector<1x1x16x16xf32>
    tpu.vector_store %arg7[%c0_88, %c1_89, %c0_90, %c0_91], %254 {strides = array<i32>} : memref<1x4x16x16xf32, #tpu.memory_space<vmem>>, vector<1x1x16x16xf32>,
    %c2_i32_92 = arith.constant 2 : i32
    %255 = arith.addi %0, %c2_i32_92 : i32
    %c0_93 = arith.constant 0 : index
    %c2 = arith.constant 2 : index
    %c0_94 = arith.constant 0 : index
    %c0_95 = arith.constant 0 : index
    %256 = vector.load %arg6[%c0_93, %c2, %c0_94, %c0_95] : memref<1x4x16x16xf32, #tpu.memory_space<vmem>>, vector<1x1x16x16xf32>
    %257 = vector.shape_cast %256 : vector<1x1x16x16xf32> to vector<16x16xf32>
    %c5_i32_96 = arith.constant 5 : i32
    %258 = arith.muli %255, %c5_i32_96 : i32
    %c2_i32_97 = arith.constant 2 : i32
    %259 = arith.addi %258, %c2_i32_97 : i32
    %260 = arith.index_cast %259 : i32 to index
    %261 = memref.load %arg2[%260] : memref<20xf32, #tpu.memory_space<smem>>
    %262 = vector.broadcast %261 : f32 to vector<16x16xf32>
    %263 = arith.mulf %262, %257 : vector<16x16xf32>
    %c5_i32_98 = arith.constant 5 : i32
    %264 = arith.muli %255, %c5_i32_98 : i32
    %c2_i32_99 = arith.constant 2 : i32
    %265 = arith.addi %264, %c2_i32_99 : i32
    %266 = arith.index_cast %265 : i32 to index
    %267 = memref.load %arg3[%266] : memref<20xf32, #tpu.memory_space<smem>>
    %268 = vector.broadcast %267 : f32 to vector<16x16xf32>
    %269 = arith.mulf %268, %257 : vector<16x16xf32>
    %c2_i32_100 = arith.constant 2 : i32
    %270 = tpu.dynamic_rotate %257 by %c2_i32_100 dim 0 : vector<16x16xf32>, i32 -> vector<16x16xf32>
    %c5_i32_101 = arith.constant 5 : i32
    %271 = arith.muli %255, %c5_i32_101 : i32
    %c0_i32_102 = arith.constant 0 : i32
    %272 = arith.addi %271, %c0_i32_102 : i32
    %273 = arith.index_cast %272 : i32 to index
    %274 = memref.load %arg2[%273] : memref<20xf32, #tpu.memory_space<smem>>
    %cst_103 = arith.constant 0.000000e+00 : f32
    %275 = vector.broadcast %cst_103 : f32 to vector<16x16xf32>
    %276 = arith.select %7, %270, %275 : vector<16x16xi1>, vector<16x16xf32>
    %277 = vector.broadcast %274 : f32 to vector<16x16xf32>
    %278 = arith.mulf %277, %276 : vector<16x16xf32>
    %279 = arith.addf %263, %278 : vector<16x16xf32>
    %c2_i32_104 = arith.constant 2 : i32
    %280 = tpu.dynamic_rotate %257 by %c2_i32_104 dim 1 : vector<16x16xf32>, i32 -> vector<16x16xf32>
    %c5_i32_105 = arith.constant 5 : i32
    %281 = arith.muli %255, %c5_i32_105 : i32
    %c0_i32_106 = arith.constant 0 : i32
    %282 = arith.addi %281, %c0_i32_106 : i32
    %283 = arith.index_cast %282 : i32 to index
    %284 = memref.load %arg3[%283] : memref<20xf32, #tpu.memory_space<smem>>
    %cst_107 = arith.constant 0.000000e+00 : f32
    %285 = vector.broadcast %cst_107 : f32 to vector<16x16xf32>
    %286 = arith.select %12, %280, %285 : vector<16x16xi1>, vector<16x16xf32>
    %287 = vector.broadcast %284 : f32 to vector<16x16xf32>
    %288 = arith.mulf %287, %286 : vector<16x16xf32>
    %289 = arith.addf %269, %288 : vector<16x16xf32>
    %c1_i32_108 = arith.constant 1 : i32
    %290 = tpu.dynamic_rotate %257 by %c1_i32_108 dim 0 : vector<16x16xf32>, i32 -> vector<16x16xf32>
    %c5_i32_109 = arith.constant 5 : i32
    %291 = arith.muli %255, %c5_i32_109 : i32
    %c1_i32_110 = arith.constant 1 : i32
    %292 = arith.addi %291, %c1_i32_110 : i32
    %293 = arith.index_cast %292 : i32 to index
    %294 = memref.load %arg2[%293] : memref<20xf32, #tpu.memory_space<smem>>
    %cst_111 = arith.constant 0.000000e+00 : f32
    %295 = vector.broadcast %cst_111 : f32 to vector<16x16xf32>
    %296 = arith.select %17, %290, %295 : vector<16x16xi1>, vector<16x16xf32>
    %297 = vector.broadcast %294 : f32 to vector<16x16xf32>
    %298 = arith.mulf %297, %296 : vector<16x16xf32>
    %299 = arith.addf %279, %298 : vector<16x16xf32>
    %c1_i32_112 = arith.constant 1 : i32
    %300 = tpu.dynamic_rotate %257 by %c1_i32_112 dim 1 : vector<16x16xf32>, i32 -> vector<16x16xf32>
    %c5_i32_113 = arith.constant 5 : i32
    %301 = arith.muli %255, %c5_i32_113 : i32
    %c1_i32_114 = arith.constant 1 : i32
    %302 = arith.addi %301, %c1_i32_114 : i32
    %303 = arith.index_cast %302 : i32 to index
    %304 = memref.load %arg3[%303] : memref<20xf32, #tpu.memory_space<smem>>
    %cst_115 = arith.constant 0.000000e+00 : f32
    %305 = vector.broadcast %cst_115 : f32 to vector<16x16xf32>
    %306 = arith.select %22, %300, %305 : vector<16x16xi1>, vector<16x16xf32>
    %307 = vector.broadcast %304 : f32 to vector<16x16xf32>
    %308 = arith.mulf %307, %306 : vector<16x16xf32>
    %309 = arith.addf %289, %308 : vector<16x16xf32>
    %c15_i32_116 = arith.constant 15 : i32
    %310 = tpu.dynamic_rotate %257 by %c15_i32_116 dim 0 : vector<16x16xf32>, i32 -> vector<16x16xf32>
    %c5_i32_117 = arith.constant 5 : i32
    %311 = arith.muli %255, %c5_i32_117 : i32
    %c3_i32_118 = arith.constant 3 : i32
    %312 = arith.addi %311, %c3_i32_118 : i32
    %313 = arith.index_cast %312 : i32 to index
    %314 = memref.load %arg2[%313] : memref<20xf32, #tpu.memory_space<smem>>
    %cst_119 = arith.constant 0.000000e+00 : f32
    %315 = vector.broadcast %cst_119 : f32 to vector<16x16xf32>
    %316 = arith.select %27, %310, %315 : vector<16x16xi1>, vector<16x16xf32>
    %317 = vector.broadcast %314 : f32 to vector<16x16xf32>
    %318 = arith.mulf %317, %316 : vector<16x16xf32>
    %319 = arith.addf %299, %318 : vector<16x16xf32>
    %c15_i32_120 = arith.constant 15 : i32
    %320 = tpu.dynamic_rotate %257 by %c15_i32_120 dim 1 : vector<16x16xf32>, i32 -> vector<16x16xf32>
    %c5_i32_121 = arith.constant 5 : i32
    %321 = arith.muli %255, %c5_i32_121 : i32
    %c3_i32_122 = arith.constant 3 : i32
    %322 = arith.addi %321, %c3_i32_122 : i32
    %323 = arith.index_cast %322 : i32 to index
    %324 = memref.load %arg3[%323] : memref<20xf32, #tpu.memory_space<smem>>
    %cst_123 = arith.constant 0.000000e+00 : f32
    %325 = vector.broadcast %cst_123 : f32 to vector<16x16xf32>
    %326 = arith.select %32, %320, %325 : vector<16x16xi1>, vector<16x16xf32>
    %327 = vector.broadcast %324 : f32 to vector<16x16xf32>
    %328 = arith.mulf %327, %326 : vector<16x16xf32>
    %329 = arith.addf %309, %328 : vector<16x16xf32>
    %c14_i32_124 = arith.constant 14 : i32
    %330 = tpu.dynamic_rotate %257 by %c14_i32_124 dim 0 : vector<16x16xf32>, i32 -> vector<16x16xf32>
    %c5_i32_125 = arith.constant 5 : i32
    %331 = arith.muli %255, %c5_i32_125 : i32
    %c4_i32_126 = arith.constant 4 : i32
    %332 = arith.addi %331, %c4_i32_126 : i32
    %333 = arith.index_cast %332 : i32 to index
    %334 = memref.load %arg2[%333] : memref<20xf32, #tpu.memory_space<smem>>
    %cst_127 = arith.constant 0.000000e+00 : f32
    %335 = vector.broadcast %cst_127 : f32 to vector<16x16xf32>
    %336 = arith.select %37, %330, %335 : vector<16x16xi1>, vector<16x16xf32>
    %337 = vector.broadcast %334 : f32 to vector<16x16xf32>
    %338 = arith.mulf %337, %336 : vector<16x16xf32>
    %339 = arith.addf %319, %338 : vector<16x16xf32>
    %c14_i32_128 = arith.constant 14 : i32
    %340 = tpu.dynamic_rotate %257 by %c14_i32_128 dim 1 : vector<16x16xf32>, i32 -> vector<16x16xf32>
    %c5_i32_129 = arith.constant 5 : i32
    %341 = arith.muli %255, %c5_i32_129 : i32
    %c4_i32_130 = arith.constant 4 : i32
    %342 = arith.addi %341, %c4_i32_130 : i32
    %343 = arith.index_cast %342 : i32 to index
    %344 = memref.load %arg3[%343] : memref<20xf32, #tpu.memory_space<smem>>
    %cst_131 = arith.constant 0.000000e+00 : f32
    %345 = vector.broadcast %cst_131 : f32 to vector<16x16xf32>
    %346 = arith.select %42, %340, %345 : vector<16x16xi1>, vector<16x16xf32>
    %347 = vector.broadcast %344 : f32 to vector<16x16xf32>
    %348 = arith.mulf %347, %346 : vector<16x16xf32>
    %349 = arith.addf %329, %348 : vector<16x16xf32>
    %350 = arith.index_cast %255 : i32 to index
    %351 = memref.load %arg4[%350] : memref<4xf32, #tpu.memory_space<smem>>
    %352 = arith.index_cast %255 : i32 to index
    %353 = memref.load %arg5[%352] : memref<4xf32, #tpu.memory_space<smem>>
    %354 = arith.addf %351, %353 : f32
    %355 = arith.addf %339, %349 : vector<16x16xf32>
    %356 = vector.broadcast %354 : f32 to vector<16x16xf32>
    %357 = arith.addf %355, %356 : vector<16x16xf32>
    %c0_132 = arith.constant 0 : index
    %c2_133 = arith.constant 2 : index
    %c0_134 = arith.constant 0 : index
    %c0_135 = arith.constant 0 : index
    %358 = vector.load %arg7[%c0_132, %c2_133, %c0_134, %c0_135] : memref<1x4x16x16xf32, #tpu.memory_space<vmem>>, vector<1x1x16x16xf32>
    %359 = vector.shape_cast %358 : vector<1x1x16x16xf32> to vector<16x16xf32>
    %360 = vector.shape_cast %357 : vector<16x16xf32> to vector<1x1x16x16xf32>
    tpu.vector_store %arg7[%c0_132, %c2_133, %c0_134, %c0_135], %360 {strides = array<i32>} : memref<1x4x16x16xf32, #tpu.memory_space<vmem>>, vector<1x1x16x16xf32>,
    %c3_i32_136 = arith.constant 3 : i32
    %361 = arith.addi %0, %c3_i32_136 : i32
    %c0_137 = arith.constant 0 : index
    %c3 = arith.constant 3 : index
    %c0_138 = arith.constant 0 : index
    %c0_139 = arith.constant 0 : index
    %362 = vector.load %arg6[%c0_137, %c3, %c0_138, %c0_139] : memref<1x4x16x16xf32, #tpu.memory_space<vmem>>, vector<1x1x16x16xf32>
    %363 = vector.shape_cast %362 : vector<1x1x16x16xf32> to vector<16x16xf32>
    %c5_i32_140 = arith.constant 5 : i32
    %364 = arith.muli %361, %c5_i32_140 : i32
    %c2_i32_141 = arith.constant 2 : i32
    %365 = arith.addi %364, %c2_i32_141 : i32
    %366 = arith.index_cast %365 : i32 to index
    %367 = memref.load %arg2[%366] : memref<20xf32, #tpu.memory_space<smem>>
    %368 = vector.broadcast %367 : f32 to vector<16x16xf32>
    %369 = arith.mulf %368, %363 : vector<16x16xf32>
    %c5_i32_142 = arith.constant 5 : i32
    %370 = arith.muli %361, %c5_i32_142 : i32
    %c2_i32_143 = arith.constant 2 : i32
    %371 = arith.addi %370, %c2_i32_143 : i32
    %372 = arith.index_cast %371 : i32 to index
    %373 = memref.load %arg3[%372] : memref<20xf32, #tpu.memory_space<smem>>
    %374 = vector.broadcast %373 : f32 to vector<16x16xf32>
    %375 = arith.mulf %374, %363 : vector<16x16xf32>
    %c2_i32_144 = arith.constant 2 : i32
    %376 = tpu.dynamic_rotate %363 by %c2_i32_144 dim 0 : vector<16x16xf32>, i32 -> vector<16x16xf32>
    %c5_i32_145 = arith.constant 5 : i32
    %377 = arith.muli %361, %c5_i32_145 : i32
    %c0_i32_146 = arith.constant 0 : i32
    %378 = arith.addi %377, %c0_i32_146 : i32
    %379 = arith.index_cast %378 : i32 to index
    %380 = memref.load %arg2[%379] : memref<20xf32, #tpu.memory_space<smem>>
    %cst_147 = arith.constant 0.000000e+00 : f32
    %381 = vector.broadcast %cst_147 : f32 to vector<16x16xf32>
    %382 = arith.select %7, %376, %381 : vector<16x16xi1>, vector<16x16xf32>
    %383 = vector.broadcast %380 : f32 to vector<16x16xf32>
    %384 = arith.mulf %383, %382 : vector<16x16xf32>
    %385 = arith.addf %369, %384 : vector<16x16xf32>
    %c2_i32_148 = arith.constant 2 : i32
    %386 = tpu.dynamic_rotate %363 by %c2_i32_148 dim 1 : vector<16x16xf32>, i32 -> vector<16x16xf32>
    %c5_i32_149 = arith.constant 5 : i32
    %387 = arith.muli %361, %c5_i32_149 : i32
    %c0_i32_150 = arith.constant 0 : i32
    %388 = arith.addi %387, %c0_i32_150 : i32
    %389 = arith.index_cast %388 : i32 to index
    %390 = memref.load %arg3[%389] : memref<20xf32, #tpu.memory_space<smem>>
    %cst_151 = arith.constant 0.000000e+00 : f32
    %391 = vector.broadcast %cst_151 : f32 to vector<16x16xf32>
    %392 = arith.select %12, %386, %391 : vector<16x16xi1>, vector<16x16xf32>
    %393 = vector.broadcast %390 : f32 to vector<16x16xf32>
    %394 = arith.mulf %393, %392 : vector<16x16xf32>
    %395 = arith.addf %375, %394 : vector<16x16xf32>
    %c1_i32_152 = arith.constant 1 : i32
    %396 = tpu.dynamic_rotate %363 by %c1_i32_152 dim 0 : vector<16x16xf32>, i32 -> vector<16x16xf32>
    %c5_i32_153 = arith.constant 5 : i32
    %397 = arith.muli %361, %c5_i32_153 : i32
    %c1_i32_154 = arith.constant 1 : i32
    %398 = arith.addi %397, %c1_i32_154 : i32
    %399 = arith.index_cast %398 : i32 to index
    %400 = memref.load %arg2[%399] : memref<20xf32, #tpu.memory_space<smem>>
    %cst_155 = arith.constant 0.000000e+00 : f32
    %401 = vector.broadcast %cst_155 : f32 to vector<16x16xf32>
    %402 = arith.select %17, %396, %401 : vector<16x16xi1>, vector<16x16xf32>
    %403 = vector.broadcast %400 : f32 to vector<16x16xf32>
    %404 = arith.mulf %403, %402 : vector<16x16xf32>
    %405 = arith.addf %385, %404 : vector<16x16xf32>
    %c1_i32_156 = arith.constant 1 : i32
    %406 = tpu.dynamic_rotate %363 by %c1_i32_156 dim 1 : vector<16x16xf32>, i32 -> vector<16x16xf32>
    %c5_i32_157 = arith.constant 5 : i32
    %407 = arith.muli %361, %c5_i32_157 : i32
    %c1_i32_158 = arith.constant 1 : i32
    %408 = arith.addi %407, %c1_i32_158 : i32
    %409 = arith.index_cast %408 : i32 to index
    %410 = memref.load %arg3[%409] : memref<20xf32, #tpu.memory_space<smem>>
    %cst_159 = arith.constant 0.000000e+00 : f32
    %411 = vector.broadcast %cst_159 : f32 to vector<16x16xf32>
    %412 = arith.select %22, %406, %411 : vector<16x16xi1>, vector<16x16xf32>
    %413 = vector.broadcast %410 : f32 to vector<16x16xf32>
    %414 = arith.mulf %413, %412 : vector<16x16xf32>
    %415 = arith.addf %395, %414 : vector<16x16xf32>
    %c15_i32_160 = arith.constant 15 : i32
    %416 = tpu.dynamic_rotate %363 by %c15_i32_160 dim 0 : vector<16x16xf32>, i32 -> vector<16x16xf32>
    %c5_i32_161 = arith.constant 5 : i32
    %417 = arith.muli %361, %c5_i32_161 : i32
    %c3_i32_162 = arith.constant 3 : i32
    %418 = arith.addi %417, %c3_i32_162 : i32
    %419 = arith.index_cast %418 : i32 to index
    %420 = memref.load %arg2[%419] : memref<20xf32, #tpu.memory_space<smem>>
    %cst_163 = arith.constant 0.000000e+00 : f32
    %421 = vector.broadcast %cst_163 : f32 to vector<16x16xf32>
    %422 = arith.select %27, %416, %421 : vector<16x16xi1>, vector<16x16xf32>
    %423 = vector.broadcast %420 : f32 to vector<16x16xf32>
    %424 = arith.mulf %423, %422 : vector<16x16xf32>
    %425 = arith.addf %405, %424 : vector<16x16xf32>
    %c15_i32_164 = arith.constant 15 : i32
    %426 = tpu.dynamic_rotate %363 by %c15_i32_164 dim 1 : vector<16x16xf32>, i32 -> vector<16x16xf32>
    %c5_i32_165 = arith.constant 5 : i32
    %427 = arith.muli %361, %c5_i32_165 : i32
    %c3_i32_166 = arith.constant 3 : i32
    %428 = arith.addi %427, %c3_i32_166 : i32
    %429 = arith.index_cast %428 : i32 to index
    %430 = memref.load %arg3[%429] : memref<20xf32, #tpu.memory_space<smem>>
    %cst_167 = arith.constant 0.000000e+00 : f32
    %431 = vector.broadcast %cst_167 : f32 to vector<16x16xf32>
    %432 = arith.select %32, %426, %431 : vector<16x16xi1>, vector<16x16xf32>
    %433 = vector.broadcast %430 : f32 to vector<16x16xf32>
    %434 = arith.mulf %433, %432 : vector<16x16xf32>
    %435 = arith.addf %415, %434 : vector<16x16xf32>
    %c14_i32_168 = arith.constant 14 : i32
    %436 = tpu.dynamic_rotate %363 by %c14_i32_168 dim 0 : vector<16x16xf32>, i32 -> vector<16x16xf32>
    %c5_i32_169 = arith.constant 5 : i32
    %437 = arith.muli %361, %c5_i32_169 : i32
    %c4_i32_170 = arith.constant 4 : i32
    %438 = arith.addi %437, %c4_i32_170 : i32
    %439 = arith.index_cast %438 : i32 to index
    %440 = memref.load %arg2[%439] : memref<20xf32, #tpu.memory_space<smem>>
    %cst_171 = arith.constant 0.000000e+00 : f32
    %441 = vector.broadcast %cst_171 : f32 to vector<16x16xf32>
    %442 = arith.select %37, %436, %441 : vector<16x16xi1>, vector<16x16xf32>
    %443 = vector.broadcast %440 : f32 to vector<16x16xf32>
    %444 = arith.mulf %443, %442 : vector<16x16xf32>
    %445 = arith.addf %425, %444 : vector<16x16xf32>
    %c14_i32_172 = arith.constant 14 : i32
    %446 = tpu.dynamic_rotate %363 by %c14_i32_172 dim 1 : vector<16x16xf32>, i32 -> vector<16x16xf32>
    %c5_i32_173 = arith.constant 5 : i32
    %447 = arith.muli %361, %c5_i32_173 : i32
    %c4_i32_174 = arith.constant 4 : i32
    %448 = arith.addi %447, %c4_i32_174 : i32
    %449 = arith.index_cast %448 : i32 to index
    %450 = memref.load %arg3[%449] : memref<20xf32, #tpu.memory_space<smem>>
    %cst_175 = arith.constant 0.000000e+00 : f32
    %451 = vector.broadcast %cst_175 : f32 to vector<16x16xf32>
    %452 = arith.select %42, %446, %451 : vector<16x16xi1>, vector<16x16xf32>
    %453 = vector.broadcast %450 : f32 to vector<16x16xf32>
    %454 = arith.mulf %453, %452 : vector<16x16xf32>
    %455 = arith.addf %435, %454 : vector<16x16xf32>
    %456 = arith.index_cast %361 : i32 to index
    %457 = memref.load %arg4[%456] : memref<4xf32, #tpu.memory_space<smem>>
    %458 = arith.index_cast %361 : i32 to index
    %459 = memref.load %arg5[%458] : memref<4xf32, #tpu.memory_space<smem>>
    %460 = arith.addf %457, %459 : f32
    %461 = arith.addf %445, %455 : vector<16x16xf32>
    %462 = vector.broadcast %460 : f32 to vector<16x16xf32>
    %463 = arith.addf %461, %462 : vector<16x16xf32>
    %c0_176 = arith.constant 0 : index
    %c3_177 = arith.constant 3 : index
    %c0_178 = arith.constant 0 : index
    %c0_179 = arith.constant 0 : index
    %464 = vector.load %arg7[%c0_176, %c3_177, %c0_178, %c0_179] : memref<1x4x16x16xf32, #tpu.memory_space<vmem>>, vector<1x1x16x16xf32>
    %465 = vector.shape_cast %464 : vector<1x1x16x16xf32> to vector<16x16xf32>
    %466 = vector.shape_cast %463 : vector<16x16xf32> to vector<1x1x16x16xf32>
    tpu.vector_store %arg7[%c0_176, %c3_177, %c0_178, %c0_179], %466 {strides = array<i32>} : memref<1x4x16x16xf32, #tpu.memory_space<vmem>>, vector<1x1x16x16xf32>,
    return
  }
  func.func @transform_0(%arg0: i32, %arg1: i32, %arg2: memref<20xf32, #tpu.memory_space<smem>>, %arg3: memref<20xf32, #tpu.memory_space<smem>>, %arg4: memref<4xf32, #tpu.memory_space<smem>>, %arg5: memref<4xf32, #tpu.memory_space<smem>>) -> (i32, i32, i32, i32) {
    %c0_i32 = arith.constant 0 : i32
    %c0_i32_0 = arith.constant 0 : i32
    %c0_i32_1 = arith.constant 0 : i32
    return %arg0, %arg1, %c0_i32, %c0_i32_0 : i32, i32, i32, i32
  }
  func.func @transform_1(%arg0: i32, %arg1: i32, %arg2: memref<20xf32, #tpu.memory_space<smem>>, %arg3: memref<20xf32, #tpu.memory_space<smem>>, %arg4: memref<4xf32, #tpu.memory_space<smem>>, %arg5: memref<4xf32, #tpu.memory_space<smem>>) -> (i32, i32, i32, i32) {
    %c0_i32 = arith.constant 0 : i32
    %c0_i32_0 = arith.constant 0 : i32
    %c0_i32_1 = arith.constant 0 : i32
    return %arg0, %arg1, %c0_i32, %c0_i32_0 : i32, i32, i32, i32
  }
}

</mosaic_0001>

<bundles_post_ra>
// kernel: td_fringe_convolution.1
= control target key start
LH: loop header
LB: loop body
LE: loop exit
PB: predicated region body
PF: predicated region fallthrough
CT: control target
= control target key end

     0   :  { %s2149_s0 = inlined_call_operand.vmem [shape: f32[20], index: 0, kind: input, shape index: {}]   ;;  %s2150_s4 = inlined_call_operand.hbm [shape: f32[2,4,16,16], index: 4, kind: input, shape index: {}]   ;;  %s2151_s5 = inlined_call_operand.hbm [shape: f32[2,4,16,16], index: 5, kind: output, shape index: {}]   ;;  %s2152_s1 = inlined_call_operand.vmem [shape: f32[20], index: 1, kind: input, shape index: {}]   ;;  %s2153_s2 = inlined_call_operand.vmem [shape: f32[4], index: 2, kind: input, shape index: {}]   ;;  %s2154_s3 = inlined_call_operand.vmem [shape: f32[4], index: 3, kind: input, shape index: {}]  }
   0x1   :  { %2166 = sst [smem:[#allocation22_spill]] %s2150_s4  ;;  %s10_s20 = sshll.u32 %s2149_s0, 4  ;;  %s11_s20 = int_to_ptr.vmem [resolvable:$true] %s10_s20 }
   0x2   :  { %s14_s23 = sshll.u32 %s2152_s1, 4  ;;  %s1059_s24 = scalar_lea.vmem %s11_s20, 16  ;;  %s15_s23 = int_to_ptr.vmem [resolvable:$true] %s14_s23 }
   0x3   :  { %p1060_p0 = scmp.ne.s32.totalorder %s11_s20, %s1059_s24  ;;  %p1064_p1 = scmp.lt.s32.totalorder %s11_s20, %s11_s20 }
   0x4   :  { %p1065_p2 = scmp.lt.s32.totalorder %s1059_s24, %s1059_s24 }
   0x6   :  { %p1066_p3 = por %p1065_p2, %p1064_p1 }
   0x8   :  { %p1067_p4 = pnand %p1066_p3, %p1060_p0 }
   0xa   :  { %1070 = shalt.err (!%p1067_p4)  }
   0xb   :  { %s1223_s25 = smov [#allocation3]   ;;  %s1071_s26 = scalar_lea.vmem %s15_s23, 16 }
   0xc   :  { %13 = dma.vmem_to_smem %s11_s20, 16, %s1223_s25, [#allocation2] }
   0xd   :  { %p1072_p5 = scmp.ne.s32.totalorder %s15_s23, %s1071_s26  ;;  %p1076_p6 = scmp.lt.s32.totalorder %s15_s23, %s15_s23 }
   0xe   :  { %p1077_p7 = scmp.lt.s32.totalorder %s1071_s26, %s1071_s26 }
  0x10   :  { %p1078_p8 = por %p1077_p7, %p1076_p6 }
  0x12   :  { %p1079_p9 = pnand %p1078_p8, %p1072_p5 }
  0x14   :  { %1082 = shalt.err (!%p1079_p9)  }
  0x15   :  { %s1224_s0 = smov [#allocation4]   ;;  %s18_s28 = sshll.u32 %s2153_s2, 4  ;;  %s19_s28 = int_to_ptr.vmem [resolvable:$true] %s18_s28 }
  0x16   :  { %17 = dma.vmem_to_smem %s15_s23, 16, %s1224_s0, [#allocation2] }
  0x17   :  { %s22_s6 = sshll.u32 %s2154_s3, 4  ;;  %s1083_s7 = scalar_lea.vmem %s19_s28, 16  ;;  %s23_s6 = int_to_ptr.vmem [resolvable:$true] %s22_s6 }
  0x18   :  { %p1084_p10 = scmp.ne.s32.totalorder %s19_s28, %s1083_s7  ;;  %p1088_p11 = scmp.lt.s32.totalorder %s19_s28, %s19_s28 }
  0x19   :  { %p1089_p12 = scmp.lt.s32.totalorder %s1083_s7, %s1083_s7 }
  0x1b   :  { %p1090_p13 = por %p1089_p12, %p1088_p11 }
  0x1d   :  { %p1091_p0 = pnand %p1090_p13, %p1084_p10 }
  0x1f   :  { %1094 = shalt.err (!%p1091_p0)  }
  0x20   :  { %s1225_s8 = smov [#allocation5]   ;;  %s1095_s9 = scalar_lea.vmem %s23_s6, 16 }
  0x21   :  { %21 = dma.vmem_to_smem %s19_s28, 16, %s1225_s8, [#allocation2] }
  0x22   :  { %p1096_p1 = scmp.ne.s32.totalorder %s23_s6, %s1095_s9  ;;  %p1100_p2 = scmp.lt.s32.totalorder %s23_s6, %s23_s6 }
  0x23   :  { %p1101_p3 = scmp.lt.s32.totalorder %s1095_s9, %s1095_s9 }
  0x25   :  { %p1102_p4 = por %p1101_p3, %p1100_p2 }
  0x27   :  { %p1103_p5 = pnand %p1102_p4, %p1096_p1 }
  0x29   :  { %1106 = shalt.err (!%p1103_p5)  }
  0x2a   :  { %s1226_s2 = smov [#allocation6]  }
  0x2b   :  { %25 = dma.vmem_to_smem %s23_s6, 16, %s1226_s2, [#allocation2] }
  0x2c   :  { %1189 = dma.done.wait [#allocation2], 64 }
  0x2d   :  { %1190 = vsyncadd [#allocation2], 4294967232 }
  0x2e   :  { %27 = sfence }
  0x2f   :  { %28 = vsyncpa [#allocation8], 0 }
  0x30   :  { %30 = vsyncpa [#allocation8 + $0x1], 0 }
  0x31   :  { %31 = vsyncpa [#allocation9], 0 }
  0x32   :  { %33 = vsyncpa [#allocation9 + $0x1], 0  ;;  %s1280_s3 = smov 0   ;;  %s1282_s10 = smov 0  }
  0x33   :  { %s1284_s11 = smov 0   ;;  %s1286_s12 = smov 0  }
  0x34   :  { %s1288_s13 = smov 0   ;;  %s1290_s14 = smov 0  }
  0x35 LB: > { %2167 = sst [smem:[#allocation14_spill]] %s1205_s10  ;;  %s911_s15 = sadd.s32 4294967295, %s1221_s14   ;;  %s1221_s14 = sphi %s1290_s14, %s39_s14   ;;  %s1217_s13 = sphi %s1288_s13, %s2227_s13   ;;  %s1213_s12 = sphi %s1286_s12, %s2226_s12   ;;  %s1209_s11 = sphi %s1284_s11, %s2225_s11   ;;  %s1205_s10 = sphi %s1282_s10, %s2224_s10   ;;  %s1201_s3 = sphi %s1280_s3, %s2223_s3  }
  0x36   : > { %2168 = sst [smem:[#allocation15_spill]] %s1209_s11  ;;  %s912_s16 = sadd.s32 4294967294, %s1221_s14  }
  0x37   : > { %2169 = sst [smem:[#allocation16_spill]] %s1217_s13  ;;  %s51_s17 = sadd.s32 1, %s1217_s13 }
  0x38   : > { %2170 = sst [smem:[#allocation17_spill]] %s1221_s14  ;;  %s60_s18 = sadd.s32 1, %s1209_s11 }
  0x39   : > { %p53_p6 = scmp.ge.s32.totalorder %s51_s17, 2  ;;  %p67_p7 = scmp.ne.s32.totalorder %s1209_s11, %s1205_s10 }
  0x3a   : > { %p68_p8 = scmp.eq.s32.totalorder %s1221_s14, 0  ;;  %p73_p9 = scmp.ne.s32.totalorder %s1205_s10, %s1201_s3 }
  0x3b   : > { %s2229_s17 = smov (%p53_p6, %s51_s17), 0  ;;  %p74_p11 = scmp.eq.s32.totalorder %s911_s15, 0 }
  0x3c   : > { %2171 = sst [smem:[#allocation18_spill]] %s2229_s17  ;;  %p1321_p10 = por %p68_p8, %p67_p7 }
  0x3d   : > { %s55_s20 = ssub.s32 %s1217_s13, %s2229_s17  ;;  %p99_p12 = scmp.eq.s32.totalorder %s911_s15, 1 }
  0x3e   : > { %p58_p13 = scmp.eq.s32.totalorder %s55_s20, 0  ;;  %p1327_p0 = por %p74_p11, %p73_p9 }
  0x3f   : > { %p1331_p1 = por %p99_p12, %p67_p7  ;;  %p105_p2 = scmp.eq.s32.totalorder %s912_s16, 1 }
  0x40   : > { %s1336_s23 = scalar_select %p58_p13, %s1209_s11, %s60_s18  }
  0x41   : > { %s2174_s22 = scalar_select %p1331_p1, 1, 0 }
  0x42   : > { %2175 = sst [smem:[#allocation19_spill]] %s1336_s23  ;;  %p1338_p3 = por %p105_p2, %p73_p9 }
  0x43   : > { %p996_p5 = scmp.lt.s32.totalorder %s1221_s14, 2  ;;  %s125_s25 = sand.u32 1, %s1209_s11  }
  0x44   : > { %s2176_s24 = scalar_select %p1338_p3, 1, 0 }
  0x45   : > { %s915_s26 = sshll.u32 %s125_s25, 6  ;;  %s982_s0 = sshll.u32 %s1217_s13, 10 }
  0x46   : > { %s2177_s4 = sld [smem:[#allocation22_spill]]  ;;  %s129_s29 = scalar_lea.vmem [#allocation7], %s915_s26 }
  0x47   : > { %s139_s30 = sshll.u32 %s129_s29, 4  ;;  %p1355_p6 = pnand %p996_p5, %p1321_p10  ;;  %s1351_s30 = int_to_ptr.vmem [resolvable:$true] %s139_s30 }
  0x48   : > { %s1360_s7 = scalar_lea.sflag [#allocation8], %s125_s25 }
  0x49   : > { %p1109_p9 = pneg %p1355_p6 }
  0x4c   : > { %s1349_s28 = scalar_lea.hbm %s2177_s4, %s982_s0  ;;  %s1112_s15 = scalar_lea.hbm %s2177_s4, 2048 }
  0x4d   : > { %s1107_s8 = scalar_lea.hbm %s1349_s28, 1024  ;;  %p1113_p10 = scmp.lt.u32.totalorder %s1349_s28, %s2177_s4 }
  0x4e   : > { %p1108_p8 = scmp.ne.s32.totalorder %s1349_s28, %s1107_s8  ;;  %p1114_p13 = scmp.lt.u32.totalorder %s1112_s15, %s1107_s8 }
  0x4f   : > { %p1116_p5 = scmp.lt.u32.totalorder %s1107_s8, %s1349_s28 }
  0x50   : > { %p1110_p11 = pnand %p1109_p9, %p1108_p8  ;;  %p1115_p2 = por %p1114_p13, %p1113_p10 }
  0x52   : > { %p1111_p12 = pneg %p1110_p11  ;;  %p1117_p4 = por %p1116_p5, %p1115_p2 }
  0x54   : > { %p1118_p7 = pnand %p1117_p4, %p1111_p12 }
  0x56   : > { %1121 = shalt.err (!%p1118_p7)
}
  0x57   : > { %s1122_s19 = scalar_lea.vmem %s1351_s30, 1024  ;;  %s1227_s20 = smov [#allocation7]  }
  0x58   : > { %p1123_p8 = scmp.ne.s32.totalorder %s1351_s30, %s1122_s19  ;;  %s1127_s25 = sshll.u32 %s1227_s20, 4  ;;  %s1128_s25 = int_to_ptr.vmem [resolvable:$false] %s1127_s25 }
  0x59   : > { %s1129_s26 = scalar_lea.vmem %s1128_s25, 2048  ;;  %p1130_p1 = scmp.lt.s32.totalorder %s1351_s30, %s1128_s25 }
  0x5a   : > { %p1125_p11 = pnand %p1123_p8, %p1109_p9  ;;  %p1131_p10 = scmp.lt.s32.totalorder %s1129_s26, %s1122_s19 }
  0x5c   : > { %p1126_p3 = pneg %p1125_p11  ;;  %p1132_p13 = por %p1131_p10, %p1130_p1 }
  0x5e   : > { %p1133_p2 = pnand %p1132_p13, %p1126_p3 }
  0x60   : > { %1136 = shalt.err (!%p1133_p2)
}
  0x61   : > { %s1228_s0 = smov 128   ;;  %s1229_s1 = smov 8  }
  0x62   : > { %991 = dma.hbm_to_vmem [thread:$0]  (!%p1355_p6), %s1349_s28, 1024, %s1351_s30, %s1360_s7, %s1228_s0, %s1228_s0, %s1229_s1  }
  0x63   : > { %p147_p4 = scmp.lt.s32.totalorder %s1221_s14, 3  ;;  %p2179_p7 = scmp.ge.s32.totalorder %s1221_s14, 1 }
  0x65   : > { %p148_p9 = pnand %p2179_p7, %p147_p4 }
  0x67   : > { %151 = sbr.rel (%p148_p9) target bundleno = 550 (0x226), region = 24 }
  0x6e   : > { %s1392_s27 = sand.u32 1, %s1205_s10  }
  0x6f   : > { %s2156_s29 = sshll.u32 %s1392_s27, 6  ;;  %s154_s8 = scalar_lea.sflag [#allocation8], %s1392_s27 }
  0x70   : > { %s157_s9 = scalar_lea.vmem [#allocation7], %s2156_s29 }
  0x71   : > { %1192 = dma.done.wait (%p1327_p0), %s154_s8, 1024  }
  0x72   : > { %1194 = vsyncadd (%p1327_p0), %s154_s8, 4294966272  ;;  %v1402_v0 = vld [vmem:[%s157_s9] sm:$0xff]  ;;  %v1404_v1 = vld [vmem:[%s157_s9 + $0x10] sm:$0xff]  ;;  %s1230_s28 = smov 16   ;;  %vm245_vm0 = vcmask 1047680   ;;  %s1231_s21 = smov 114   ;;  %v179_v40 = vlaneseq }
  0x73   : > { %246 = vrot.lane.b32.xlu0 %v1402_v0, %s1230_s28  ;;  %395 = vrot.lane.b32.xlu1 %v1404_v1, %s1230_s28  ;;  %v1410_v2 = vld [vmem:[%s157_s9 + $0x8] sm:$0xff]  ;;  %v1412_v3 = vld [vmem:[%s157_s9 + $0x18] sm:$0xff]  ;;  %s1232_s30 = smov 113   ;;  %s1233_s6 = smov 127   ;;  %v232_v43 = vrot.slane %v1402_v0, 6  ;;  %v274_v47 = vrot.slane %v1402_v0, 7 }
  0x74   : > { %v1418_v4 = vld [vmem:[%s157_s9 + $0x20] sm:$0xff]  ;;  %v1420_v5 = vld [vmem:[%s157_s9 + $0x28] sm:$0xff]  ;;  %v1426_v6 = vld [vmem:[%s157_s9 + $0x30] sm:$0xff]  ;;  %s1234_s7 = smov 126   ;;  %s1474_s2 = sld [smem:[#allocation4 + $0x2]]  ;;  %v1478_v41 = vshrl.u32 %v179_v40, 7 }
  0x75   : > { %v1428_v7 = vld [vmem:[%s157_s9 + $0x38] sm:$0xff]  ;;  %s1476_s15 = sld [smem:[#allocation4]]  ;;  %s1480_s16 = sld [smem:[#allocation4 + $0x7]]  ;;  %v233_v42 = vrot.slane %v1410_v2, 6  ;;  %v275_v45 = vrot.slane %v1410_v2, 7  ;;  %v1518_v48 = vand.u32 127, %v179_v40 }
  0x76   : > { %s1482_s18 = sld [smem:[#allocation4 + $0xc]]  ;;  %s1484_s19 = sld [smem:[#allocation3 + $0x2]]  ;;  %vm234_vm1 = vcmp.lt.s32.totalorder %v1478_v41, 2  ;;  %vm184_vm2 = vcmp.ge.s32.totalorder %v1478_v41, 2  ;;  %vm276_vm3 = vcmp.lt.s32.totalorder %v1478_v41, 1  ;;  %vm193_vm4 = vcmp.ge.s32.totalorder %v1478_v41, 1 }
  0x77   : > { %249 = vrot.lane.b32.xlu0 %v1410_v2, %s1230_s28  ;;  %398 = vrot.lane.b32.xlu1 %v1412_v3, %s1230_s28  ;;  %s1486_s20 = sld [smem:[#allocation3]]  ;;  %s1488_s25 = sld [smem:[#allocation4 + $0x5]]  ;;  %v236_v46 = vsel %vm234_vm1, %v233_v42, %v232_v43  ;;  %v278_v58 = vsel %vm276_vm3, %v275_v45, %v274_v47  ;;  %vm304_vm5 = vcmp.lt.s32.totalorder %v1478_v41, 7  ;;  %vm332_vm6 = vcmp.lt.s32.totalorder %v1478_v41, 6 }
  0x78   : > { %s1492_s26 = sld [smem:[#allocation4 + $0xa]]  ;;  %s1494_s0 = sld [smem:[#allocation4 + $0x11]]  ;;  %v238_v55 = vsel %vm184_vm2, %v236_v46, 0.0  ;;  %v277_v46 = vsel %vm276_vm3, %v274_v47, %v275_v45  ;;  %vm190_vm9 = vcmp.ge.s32.totalorder %v1518_v48, 2  ;;  %vm191_vm10 = vcmp.lt.s32.totalorder %v1518_v48, 18 }
  0x79   : > { %s1497_s1 = sld [smem:[#allocation4 + $0xf]]  ;;  %s1499_s8 = sld [smem:[#allocation4 + $0x1]]  ;;  %vm199_vm11 = vcmp.ge.s32.totalorder %v1518_v48, 1  ;;  %vm200_vm12 = vcmp.lt.s32.totalorder %v1518_v48, 17  ;;  %vm1850_vm13 = vmand %vm190_vm9, %vm191_vm10  ;;  %vm209_vm14 = vcmp.lt.s32.totalorder %v1518_v48, 15 }
  0x7a   : > { %v229_v44 = vstv %s1474_s2  ;;  %s1502_s9 = sld [smem:[#allocation4 + $0x6]]  ;;  %s1537_s2 = sld [smem:[#allocation3 + $0x3]]  ;;  %vm1904_vm15 = vmand %vm199_vm11, %vm200_vm12 }
  0x7b   : > { %541 = vrot.lane.b32.xlu0 %v1418_v4, %s1230_s28  ;;  %544 = vrot.lane.b32.xlu1 %v1420_v5, %s1230_s28  ;;  %v1522_v50 = vmul.f32 %v229_v44, %v1402_v0  ;;  %v380_v51 = vstv %s1480_s16  ;;  %v1531_v56 = vmul.f32 %v229_v44, %v1410_v2  ;;  %s1560_s16 = sld [smem:[#allocation3 + $0x7]]  ;;  %s1613_s29 = sld [smem:[#allocation4 + $0x12]] }
  0x7c   : > { %v526_v52 = vstv %s1482_s18  ;;  %v225_v53 = vstv %s1484_s19  ;;  %v1546_v59 = vmul.f32 %v1404_v1, %v380_v51  ;;  %v1549_v60 = vmul.f32 %v1412_v3, %v380_v51  ;;  %s1562_s18 = sld [smem:[#allocation3 + $0x5]]  ;;  %s1583_s19 = sld [smem:[#allocation3 + $0x6]] }
  0x7d   : > { %v240_v54 = vstv %s1486_s20  ;;  %v1554_v63 = vmul.f32 %v1418_v4, %v526_v52  ;;  %s1585_s20 = sld [smem:[#allocation3 + $0x4]]  ;;  %s1652_s4 = sld [smem:[#allocation5]] }
  0x7e   : > { %v672_v62 = vstv %s1494_s0  ;;  %s1603_s0 = sld [smem:[#allocation3 + $0x8]]  ;;  %s1664_s13 = sld [smem:[#allocation5 + $0x1]] }
  0x7f   : > { %687 = vrot.lane.b32.xlu0 %v1426_v6, %s1230_s28  ;;  %690 = vrot.lane.b32.xlu1 %v1428_v7, %s1230_s28  ;;  %s1654_s17 = sld [smem:[#allocation6]]  ;;  %s1666_s23 = sld [smem:[#allocation6 + $0x1]] }
  0x80   : > { %s1723_s14 = sld [smem:[#allocation3 + $0xf]]  ;;  %p2219_p1 = scmp.ne.s32.totalorder %s2174_s22, 0 }
  0x85   : > { %s360_s11 = sadd.f32 %s1654_s17, %s1652_s4  ;;  %s1727_s4 = sld [smem:[#allocation3 + $0xd]] }
  0x86   : > { %s506_s10 = sadd.f32 %s1666_s23, %s1664_s13  ;;  %s1749_s13 = sld [smem:[#allocation3 + $0x10]] }
  0x87   : > { %s1817_s17 = sld [smem:[#allocation5 + $0x2]] }
  0x88   : > { %s1819_s23 = sld [smem:[#allocation6 + $0x2]] }
  0x8c   : > { %v723_v49 = vstv %s1749_s13 }
  0xe5   : > { %v247_v8 = vpop.permute.xlu0 %246  ;;  %v396_v9 = vpop.permute.xlu1 %395 }
  0xe6   : > { %v248_v10 = vsel %vm245_vm0, %v247_v8, %v1402_v0  ;;  %v397_v11 = vsel %vm245_vm0, %v396_v9, %v1404_v1  ;;  %v1557_v8 = vmul.f32 %v1420_v5, %v526_v52  ;;  %v226_v9 = vmul.f32 %v225_v53, %v1402_v0 }
  0xe7   : > { %252 = vrot.lane.b32.xlu0 %v248_v10, %s1230_s28  ;;  %v241_v10 = vmul.f32 %v240_v54, %v238_v55  ;;  %v450_v52 = vrot.slane %v1404_v1, 1 }
  0xe9   : > { %v250_v12 = vpop.permute.xlu0 %249  ;;  %v399_v13 = vpop.permute.xlu1 %398 }
  0xea   : > { %v251_v14 = vsel %vm245_vm0, %v250_v12, %v1410_v2  ;;  %v400_v15 = vsel %vm245_vm0, %v399_v13, %v1412_v3  ;;  %v281_v12 = vsel %vm193_vm4, %v278_v58, 0.0  ;;  %v383_v13 = vrot.slane %v1404_v1, 6 }
  0xeb   : > { %401 = vrot.lane.b32.xlu0 %v397_v11, %s1230_s28  ;;  %254 = vrot.lane.b32.xlu1 %v251_v14, %s1230_s28  ;;  %v384_v14 = vrot.slane %v1412_v3, 6 }
  0xed   : > { %v542_v16 = vpop.permute.xlu0 %541  ;;  %v545_v17 = vpop.permute.xlu1 %544 }
  0xee   : > { %v543_v18 = vsel %vm245_vm0, %v542_v16, %v1418_v4  ;;  %v546_v19 = vsel %vm245_vm0, %v545_v17, %v1420_v5  ;;  %v1574_v17 = vmul.f32 %v1428_v7, %v672_v62 }
  0xef   : > { %403 = vrot.lane.b32.xlu1 %v400_v15, %s1230_s28  ;;  %547 = vrot.lane.b32.xlu0 %v543_v18, %s1230_s28  ;;  %v1570_v15 = vmul.f32 %v1426_v6, %v672_v62 }
  0xf0   : > { %2180 = vst [vmem:[#allocation20_spill] sm:$0xff] %v1574_v17  ;;  %v2182_v17 = vrot.slane %v1428_v7, 7 }
  0xf1   : > { %v688_v20 = vpop.permute.xlu0 %687  ;;  %v691_v21 = vpop.permute.xlu1 %690 }
  0xf2   : > { %v689_v22 = vsel %vm245_vm0, %v688_v20, %v1426_v6  ;;  %v692_v23 = vsel %vm245_vm0, %v691_v21, %v1428_v7 }
  0xf3   : > { %549 = vrot.lane.b32.xlu1 %v546_v19, %s1230_s28  ;;  %693 = vrot.lane.b32.xlu0 %v689_v22, %s1230_s28  ;;  %v604_v19 = vstv %s1727_s4 }
  0xf7   : > { %695 = vrot.lane.b32.xlu1 %v692_v23, %s1230_s28  ;;  %s1504_s28 = sld [smem:[#allocation3 + $0x1]]  ;;  %v303_v23 = vrot.slane %v1410_v2, 1 }
  0xfd   : > { %v283_v11 = vstv %s1504_s28  ;;  %s1611_s28 = sld [smem:[#allocation4 + $0xd]] }
  0xfe   : > { %v285_v62 = vmul.f32 %v283_v11, %v277_v46 }
 0x159   : > { %v253_v24 = vpop.permute.xlu0 %252 }
 0x15a   : > { %v256_v25 = vsel %vm245_vm0, %v253_v24, %v1402_v0  ;;  %v243_v24 = vadd.f32 %v241_v10, %v226_v9  ;;  %v431_v10 = vstv %s1583_s19  ;;  %s1687_s19 = sld [smem:[#allocation4 + $0x9]] }
 0x15b   : > { %261 = vrot.lane.b32.xlu0 %v256_v25, %s1231_s21 }
 0x15d   : > { %v255_v26 = vpop.permute.xlu1 %254  ;;  %v402_v27 = vpop.permute.xlu0 %401 }
 0x15e   : > { %v257_v28 = vsel %vm245_vm0, %v255_v26, %v1410_v2  ;;  %v405_v29 = vsel %vm245_vm0, %v402_v27, %v1404_v1  ;;  %v302_v26 = vrot.slane %v1402_v0, 1  ;;  %v235_v27 = vsel %vm234_vm1, %v232_v43, %v233_v42 }
 0x15f   : > { %263 = vrot.lane.b32.xlu1 %v257_v28, %s1231_s21  ;;  %410 = vrot.lane.b32.xlu0 %v405_v29, %s1231_s21  ;;  %v390_v42 = vstv %s1562_s18  ;;  %s1646_s18 = sld [smem:[#allocation3 + $0xc]] }
 0x160   : > { %v305_v44 = vsel %vm304_vm5, %v302_v26, %v303_v23 }
 0x161   : > { %v404_v30 = vpop.permute.xlu1 %403  ;;  %v548_v31 = vpop.permute.xlu0 %547 }
 0x162   : > { %v406_v32 = vsel %vm245_vm0, %v404_v30, %v1412_v3  ;;  %v551_v33 = vsel %vm245_vm0, %v548_v31, %v1418_v4  ;;  %v424_v30 = vrot.slane %v1412_v3, 7 }
 0x163   : > { %412 = vrot.lane.b32.xlu1 %v406_v32, %s1231_s21  ;;  %556 = vrot.lane.b32.xlu0 %v551_v33, %s1231_s21 }
 0x165   : > { %v550_v34 = vpop.permute.xlu1 %549  ;;  %v694_v35 = vpop.permute.xlu0 %693 }
 0x166   : > { %v552_v36 = vsel %vm245_vm0, %v550_v34, %v1420_v5  ;;  %v697_v37 = vsel %vm245_vm0, %v694_v35, %v1426_v6  ;;  %v331_v34 = vrot.slane %v1410_v2, 2  ;;  %v330_v35 = vrot.slane %v1402_v0, 2 }
 0x167   : > { %558 = vrot.lane.b32.xlu1 %v552_v36, %s1231_s21  ;;  %702 = vrot.lane.b32.xlu0 %v697_v37, %s1231_s21  ;;  %v306_v0 = vsel %vm304_vm5, %v303_v23, %v302_v26  ;;  %v458_v26 = vstv %s1603_s0  ;;  %s1704_s0 = sld [smem:[#allocation3 + $0xb]] }
 0x169   : > { %v696_v38 = vpop.permute.xlu1 %695 }
 0x16a   : > { %v698_v39 = vsel %vm245_vm0, %v696_v38, %v1428_v7  ;;  %v242_v38 = vmul.f32 %v240_v54, %v235_v27  ;;  %v477_v27 = vrot.slane %v1404_v1, 2  ;;  %vm218_vm0 = vcmp.lt.s32.totalorder %v1518_v48, 14 }
 0x16b   : > { %704 = vrot.lane.b32.xlu1 %v698_v39, %s1231_s21  ;;  %289 = vrot.lane.b32.xlu0 %v256_v25, %s1232_s30  ;;  %s1506_s21 = sld [smem:[#allocation4 + $0xb]] }
 0x16f   : > { %291 = vrot.lane.b32.xlu1 %v257_v28, %s1232_s30  ;;  %437 = vrot.lane.b32.xlu0 %v405_v29, %s1232_s30 }
 0x173   : > { %439 = vrot.lane.b32.xlu1 %v406_v32, %s1232_s30  ;;  %583 = vrot.lane.b32.xlu0 %v551_v33, %s1232_s30 }
 0x177   : > { %585 = vrot.lane.b32.xlu1 %v552_v36, %s1232_s30  ;;  %729 = vrot.lane.b32.xlu0 %v697_v37, %s1232_s30 }
 0x17b   : > { %731 = vrot.lane.b32.xlu1 %v698_v39, %s1232_s30  ;;  %317 = vrot.lane.b32.xlu0 %v256_v25, %s1233_s6  ;;  %s1513_s30 = sld [smem:[#allocation4 + $0x10]] }
 0x17f   : > { %319 = vrot.lane.b32.xlu1 %v257_v28, %s1233_s6  ;;  %464 = vrot.lane.b32.xlu0 %v405_v29, %s1233_s6 }
 0x183   : > { %466 = vrot.lane.b32.xlu1 %v406_v32, %s1233_s6  ;;  %610 = vrot.lane.b32.xlu0 %v551_v33, %s1233_s6 }
 0x187   : > { %612 = vrot.lane.b32.xlu1 %v552_v36, %s1233_s6  ;;  %756 = vrot.lane.b32.xlu0 %v697_v37, %s1233_s6 }
 0x18b   : > { %758 = vrot.lane.b32.xlu1 %v698_v39, %s1233_s6  ;;  %345 = vrot.lane.b32.xlu0 %v256_v25, %s1234_s7  ;;  %s1515_s6 = sld [smem:[#allocation4 + $0x3]]  ;;  %v284_v25 = vmul.f32 %v283_v11, %v281_v12  ;;  %v339_v12 = vstv %s1585_s20  ;;  %s1702_s20 = sld [smem:[#allocation3 + $0xa]] }
 0x18d   : > { %v286_v43 = vadd.f32 %v284_v25, %v243_v24  ;;  %v333_v24 = vsel %vm332_vm6, %v330_v35, %v331_v34 }
 0x18f   : > { %347 = vrot.lane.b32.xlu1 %v257_v28, %s1234_s7  ;;  %491 = vrot.lane.b32.xlu0 %v405_v29, %s1234_s7  ;;  %v386_v28 = vsel %vm234_vm1, %v384_v14, %v383_v13  ;;  %v423_v29 = vrot.slane %v1404_v1, 7 }
 0x190   : > { %v388_v40 = vsel %vm184_vm2, %v386_v28, 0.0  ;;  %v385_v28 = vsel %vm234_vm1, %v383_v13, %v384_v14  ;;  %v340_v14 = vmul.f32 %v339_v12, %v333_v24  ;;  %v522_v24 = vstv %s1646_s18  ;;  %s1829_s18 = sld [smem:[#allocation4 + $0xe]] }
 0x191   : > { %v426_v51 = vsel %vm276_vm3, %v424_v30, %v423_v29  ;;  %v391_v47 = vmul.f32 %v390_v42, %v388_v40 }
 0x192   : > { %v429_v9 = vsel %vm193_vm4, %v426_v51, 0.0 }
 0x193   : > { %493 = vrot.lane.b32.xlu1 %v406_v32, %s1234_s7  ;;  %637 = vrot.lane.b32.xlu0 %v551_v33, %s1234_s7  ;;  %v311_v32 = vstv %s1537_s2  ;;  %v1601_v33 = vadd.s32 8, %v1478_v41  ;;  %s1633_s2 = sld [smem:[#allocation4 + $0x4]] }
 0x194   : > { %v312_v23 = vmul.f32 %v311_v32, %v305_v44 }
 0x195   : > { %vm205_vm7 = vcmp.lt.s32.totalorder %v1601_v33, 15  ;;  %vm214_vm8 = vcmp.lt.s32.totalorder %v1601_v33, 14 }
 0x196   : > { %v310_v25 = vsel %vm205_vm7, %v306_v0, 0.0  ;;  %v314_v13 = vadd.f32 %v312_v23, %v286_v43 }
 0x197   : > { %639 = vrot.lane.b32.xlu1 %v552_v36, %s1234_s7  ;;  %783 = vrot.lane.b32.xlu0 %v697_v37, %s1234_s7  ;;  %v227_v36 = vmul.f32 %v225_v53, %v1410_v2  ;;  %v334_v2 = vsel %vm332_vm6, %v331_v34, %v330_v35  ;;  %v451_v53 = vrot.slane %v1412_v3, 1  ;;  %v432_v35 = vmul.f32 %v431_v10, %v429_v9 }
 0x198   : > { %v338_v11 = vsel %vm214_vm8, %v334_v2, 0.0  ;;  %v313_v2 = vmul.f32 %v311_v32, %v310_v25  ;;  %v682_v9 = vstv %s1723_s14  ;;  %s1809_s14 = sld [smem:[#allocation3 + $0x13]] }
 0x199   : > { %v244_v58 = vadd.f32 %v242_v38, %v227_v36  ;;  %v452_v36 = vsel %vm304_vm5, %v450_v52, %v451_v53  ;;  %v478_v38 = vrot.slane %v1412_v3, 2  ;;  %v341_v21 = vmul.f32 %v339_v12, %v338_v11 }
 0x19a   : > { %v459_v31 = vmul.f32 %v458_v26, %v452_v36  ;;  %v530_v12 = vrot.slane %v1420_v5, 6  ;;  %v570_v36 = vrot.slane %v1420_v5, 7 }
 0x19b   : > { %785 = vrot.lane.b32.xlu1 %v698_v39, %s1234_s7  ;;  %s1534_s7 = sld [smem:[#allocation4 + $0x8]]  ;;  %v376_v39 = vstv %s1560_s16  ;;  %s1644_s16 = sld [smem:[#allocation3 + $0x9]]  ;;  %v287_v0 = vadd.f32 %v285_v62, %v244_v58  ;;  %v425_v58 = vsel %vm276_vm3, %v423_v29, %v424_v30  ;;  %v479_v43 = vsel %vm332_vm6, %v477_v27, %v478_v38 }
 0x19c   : > { %v377_v45 = vmul.f32 %v1404_v1, %v376_v39  ;;  %v480_v30 = vsel %vm332_vm6, %v478_v38, %v477_v27  ;;  %v433_v23 = vmul.f32 %v431_v10, %v425_v58  ;;  %v675_v27 = vrot.slane %v1426_v6, 6 }
 0x19d   : > { %v315_v29 = vadd.f32 %v313_v2, %v287_v0  ;;  %v569_v10 = vrot.slane %v1418_v4, 7  ;;  %v1739_v2 = vstv %s360_s11  ;;  %s1784_s11 = sld [smem:[#allocation3 + $0xe]] }
 0x19e   : > { %v393_v34 = vadd.f32 %v391_v47, %v377_v45  ;;  %v378_v45 = vmul.f32 %v1412_v3, %v376_v39  ;;  %v392_v47 = vmul.f32 %v390_v42, %v385_v28  ;;  %v453_v39 = vsel %vm304_vm5, %v451_v53, %v450_v52 }
 0x19f   : > { %v529_v42 = vrot.slane %v1418_v4, 6  ;;  %v1718_v52 = vadd.f32 %v340_v14, %v314_v13  ;;  %v457_v11 = vsel %vm205_vm7, %v453_v39, 0.0  ;;  %v676_v28 = vrot.slane %v1428_v7, 6 }
 0x1a0   : > { %v434_v32 = vadd.f32 %v432_v35, %v393_v34  ;;  %v394_v53 = vadd.f32 %v392_v47, %v378_v45  ;;  %v484_v35 = vsel %vm214_vm8, %v480_v30, 0.0  ;;  %v1741_v13 = vadd.f32 %v341_v21, %v315_v29 }
 0x1a1   : > { %v485_v62 = vstv %s1644_s16  ;;  %s1716_s16 = sld [smem:[#allocation3 + $0x11]]  ;;  %v1746_v45 = vstv %s506_s10  ;;  %v460_v58 = vmul.f32 %v458_v26, %v457_v11  ;;  %v678_v39 = vsel %vm234_vm1, %v676_v28, %v675_v27  ;;  %s1775_s10 = sld [smem:[#allocation3 + $0x12]] }
 0x1a2   : > { %v486_v25 = vmul.f32 %v485_v62, %v479_v43  ;;  %v461_v34 = vadd.f32 %v459_v31, %v434_v32  ;;  %v532_v31 = vsel %vm234_vm1, %v530_v12, %v529_v42  ;;  %2181 = vst [vmem:[#allocation21_spill] sm:$0xff] %v1746_v45  ;;  %v435_v47 = vadd.f32 %v433_v23, %v394_v53 }
 0x1a3   : > { %v523_v32 = vmul.f32 %v1418_v4, %v522_v24  ;;  %v1751_v43 = vmul.f32 %v485_v62, %v484_v35  ;;  %v2163_v21 = vrot.slane %v1426_v6, 7  ;;  %v2164_v29 = vrot.slane %v1428_v7, 7 }
 0x1a4   : > { %v1757_v30 = vadd.f32 %v486_v25, %v461_v34  ;;  %v534_v26 = vsel %vm184_vm2, %v532_v31, 0.0  ;;  %v536_v53 = vstv %s1702_s20  ;;  %v572_v23 = vsel %vm276_vm3, %v570_v36, %v569_v10  ;;  %s1864_s20 = sld [smem:[#allocation4 + $0x13]] }
 0x1a5   : > { %v577_v35 = vstv %s1704_s0  ;;  %v596_v25 = vrot.slane %v1418_v4, 1  ;;  %v597_v34 = vrot.slane %v1420_v5, 1  ;;  %v531_v31 = vsel %vm234_vm1, %v529_v42, %v530_v12  ;;  %s652_s0 = sadd.f32 %s1819_s23, %s1817_s17 }
 0x1a6   : > { %v462_v51 = vadd.f32 %v460_v58, %v435_v47  ;;  %v680_v46 = vsel %vm184_vm2, %v678_v39, 0.0  ;;  %v537_v20 = vmul.f32 %v536_v53, %v534_v26  ;;  %v575_v22 = vsel %vm193_vm4, %v572_v23, 0.0 }
 0x1a7   : > { %v668_v14 = vstv %s1716_s16  ;;  %v718_v42 = vsel %vm276_vm3, %v2164_v29, %v2163_v21  ;;  %v623_v12 = vrot.slane %v1418_v4, 2  ;;  %v624_v47 = vrot.slane %v1420_v5, 2 }
 0x1a8   : > { %v524_v58 = vmul.f32 %v1420_v5, %v522_v24  ;;  %v538_v39 = vmul.f32 %v536_v53, %v531_v31  ;;  %v571_v18 = vsel %vm276_vm3, %v569_v10, %v570_v36  ;;  %v599_v16 = vsel %vm304_vm5, %v597_v34, %v596_v25 }
 0x1a9   : > { %v669_v61 = vmul.f32 %v1426_v6, %v668_v14  ;;  %v683_v57 = vmul.f32 %v682_v9, %v680_v46  ;;  %v721_v4 = vsel %vm193_vm4, %v718_v42, 0.0  ;;  %v742_v5 = vrot.slane %v1426_v6, 1 }
 0x1aa   : > { %v743_v24 = vrot.slane %v1428_v7, 1  ;;  %v539_v53 = vadd.f32 %v537_v20, %v523_v32  ;;  %v578_v31 = vmul.f32 %v577_v35, %v575_v22  ;;  %v598_v10 = vsel %vm304_vm5, %v596_v25, %v597_v34 }
 0x1ab   : > { %v677_v36 = vsel %vm234_vm1, %v675_v27, %v676_v28  ;;  %v540_v46 = vadd.f32 %v538_v39, %v524_v58  ;;  %v579_v42 = vmul.f32 %v577_v35, %v571_v18  ;;  %v603_v20 = vsel %vm205_vm7, %v599_v16, 0.0 }
 0x1ac   : > { %v626_v22 = vsel %vm332_vm6, %v624_v47, %v623_v12  ;;  %v685_v28 = vadd.f32 %v683_v57, %v669_v61  ;;  %v724_v25 = vmul.f32 %v723_v49, %v721_v4  ;;  %v750_v34 = vstv %s1775_s10 }
 0x1ad   : > { %v769_v21 = vrot.slane %v1426_v6, 2  ;;  %v744_v18 = vsel %vm304_vm5, %v742_v5, %v743_v24  ;;  %v770_v35 = vrot.slane %v1428_v7, 2  ;;  %v670_v16 = vmul.f32 %v1428_v7, %v668_v14 }
 0x1ae   : > { %v684_v58 = vmul.f32 %v682_v9, %v677_v36  ;;  %v605_v39 = vmul.f32 %v604_v19, %v598_v10  ;;  %v625_v29 = vsel %vm332_vm6, %v623_v12, %v624_v47  ;;  %v631_v45 = vstv %s1784_s11 }
 0x1af   : > { %v2183_v57 = vrot.slane %v1426_v6, 7  ;;  %v580_v9 = vadd.f32 %v578_v31, %v539_v53  ;;  %v581_v4 = vadd.f32 %v579_v42, %v540_v46  ;;  %v606_v12 = vmul.f32 %v604_v19, %v603_v20 }
 0x1b0   : > { %v745_v7 = vsel %vm304_vm5, %v743_v24, %v742_v5  ;;  %v630_v10 = vsel %vm214_vm8, %v626_v22, 0.0  ;;  %v726_v36 = vadd.f32 %v724_v25, %v685_v28  ;;  %v751_v53 = vmul.f32 %v750_v34, %v744_v18 }
 0x1b1   : > { %v717_v61 = vsel %vm276_vm3, %v2183_v57, %v2182_v17  ;;  %v1860_v17 = vadd.f32 %v1751_v43, %v462_v51  ;;  %v771_v19 = vsel %vm332_vm6, %v769_v21, %v770_v35  ;;  %v777_v5 = vstv %s1809_s14 }
 0x1b2   : > { %v686_v24 = vadd.f32 %v684_v58, %v670_v16  ;;  %v725_v31 = vmul.f32 %v723_v49, %v717_v61  ;;  %v632_v43 = vmul.f32 %v631_v45, %v625_v29  ;;  %v749_v46 = vsel %vm205_vm7, %v745_v7, 0.0 }
 0x1b3   : > { %v772_v42 = vsel %vm332_vm6, %v770_v35, %v769_v21  ;;  %v607_v22 = vadd.f32 %v605_v39, %v580_v9  ;;  %v608_v49 = vadd.f32 %v606_v12, %v581_v4  ;;  %v633_v28 = vmul.f32 %v631_v45, %v630_v10 }
 0x1b4   : > { %v645_v18 = vstv %s1829_s18  ;;  %v753_v16 = vadd.f32 %v751_v53, %v726_v36  ;;  %v778_v41 = vmul.f32 %v777_v5, %v771_v19  ;;  %v2186_v21 = vstv %s1476_s15  ;;  %s2012_s15 = sld [smem:[#allocation5 + $0x3]] }
 0x1b5   : > { %v727_v58 = vadd.f32 %v725_v31, %v686_v24  ;;  %v752_v57 = vmul.f32 %v750_v34, %v749_v46  ;;  %v2187_v39 = vmov %v2186_v21  ;;  %v1911_v4 = vadd.f32 %v632_v43, %v607_v22 }
 0x1b6   : > { %v1915_v12 = vadd.f32 %v633_v28, %v608_v49  ;;  %v1920_v36 = vadd.f32 %v778_v41, %v753_v16  ;;  %v791_v53 = vstv %s1864_s20  ;;  %vm366_vm1 = vcmask 130048  }
 0x1b7   : > { %v1939_v49 = vadd.f32 %v752_v57, %v727_v58 }
 0x1cd   : > { %v1609_v37 = vpop.permute.xlu0 %261 }
 0x1ce   : > { %v267_v51 = vsel %vm1850_vm13, %v1609_v37, 0.0 }
 0x1cf   : > { %v270_v35 = vmul.f32 %v2186_v21, %v267_v51  ;;  %v2192_v51 = vstv %s1492_s26  ;;  %s2213_s26 = sshll.u32 %s1392_s27, 6 }
 0x1d0   : > { %v2193_v46 = vmov %v2192_v51 }
 0x1d1   : > { %v1648_v54 = vpop.permute.xlu1 %263  ;;  %v1650_v55 = vpop.permute.xlu0 %410 }
 0x1d2   : > { %v268_v20 = vsel %vm1850_vm13, %v1648_v54, 0.0  ;;  %v416_v37 = vsel %vm1850_vm13, %v1650_v55, 0.0  ;;  %v776_v54 = vsel %vm214_vm8, %v772_v42, 0.0 }
 0x1d3   : > { %v271_v45 = vmul.f32 %v2187_v39, %v268_v20  ;;  %v1923_v19 = vmul.f32 %v777_v5, %v776_v54  ;;  %v2197_v54 = vstv %s1502_s9 }
 0x1d5   : > { %v1681_v40 = vpop.permute.xlu1 %412  ;;  %v1683_v44 = vpop.permute.xlu0 %556  ;;  %v273_v22 = vadd.f32 %v271_v45, %v1531_v56  ;;  %v2198_v45 = vstv %s1515_s6 }
 0x1d6   : > { %v417_v55 = vsel %vm1850_vm13, %v1681_v40, 0.0  ;;  %v562_v61 = vsel %vm1850_vm13, %v1683_v44, 0.0  ;;  %v2190_v40 = vstv %s1488_s25  ;;  %v1913_v44 = vstv %s652_s0  ;;  %s2014_s25 = sld [smem:[#allocation6 + $0x3]] }
 0x1d7   : > { %v419_v9 = vmul.f32 %v2190_v40, %v416_v37  ;;  %v2191_v24 = vmov %v2190_v40  ;;  %v565_v43 = vmul.f32 %v2192_v51, %v562_v61  ;;  %v2194_v37 = vstv %s1497_s1  ;;  %s2039_s1 = scalar_lea.vmem [#allocation10], %s2213_s26 }
 0x1d8   : > { %v420_v31 = vmul.f32 %v2191_v24, %v417_v55  ;;  %v2199_v61 = vmov %v2194_v37  ;;  %v2201_v40 = vstv %s1506_s21  ;;  %v2202_v51 = vmov %v2198_v45  ;;  %s824_s9 = sshll.u32 %s2039_s1, 4  ;;  %s2098_s9 = int_to_ptr.vmem [resolvable:$true] %s824_s9 }
 0x1d9   : > { %v1706_v3 = vpop.permute.xlu1 %558  ;;  %v1708_v1 = vpop.permute.xlu0 %702  ;;  %v421_v28 = vadd.f32 %v419_v9, %v1546_v59  ;;  %v567_v14 = vadd.f32 %v565_v43, %v1554_v63 }
 0x1da   : > { %v563_v34 = vsel %vm1850_vm13, %v1706_v3, 0.0  ;;  %v708_v3 = vsel %vm1850_vm13, %v1708_v1, 0.0  ;;  %v272_v1 = vadd.f32 %v270_v35, %v1522_v50 }
 0x1db   : > { %v566_v42 = vmul.f32 %v2193_v46, %v563_v34  ;;  %v711_v16 = vmul.f32 %v2194_v37, %v708_v3  ;;  %v2200_v34 = vmov %v2197_v54  ;;  %v2203_v46 = vstv %s1534_s7  ;;  %s1137_s7 = scalar_lea.vmem %s2098_s9, 1024 }
 0x1dc   : > { %v2204_v37 = vstv %s1633_s2  ;;  %p1138_p0 = scmp.ne.s32.totalorder %s2098_s9, %s1137_s7 }
 0x1dd   : > { %v1735_v38 = vpop.permute.xlu1 %704  ;;  %v1737_v0 = vpop.permute.xlu0 %289 }
 0x1de   : > { %v295_v20 = vsel %vm1904_vm15, %v1737_v0, 0.0  ;;  %v709_v56 = vsel %vm1850_vm13, %v1735_v38, 0.0  ;;  %v568_v38 = vadd.f32 %v566_v42, %v1557_v8  ;;  %p1139_p3 = pnand %p1138_p0, %p2219_p1 }
 0x1df   : > { %v712_v63 = vmul.f32 %v2199_v61, %v709_v56  ;;  %v2210_v61 = vstv %s1687_s19 }
 0x1e0   : > { %p1140_p6 = pneg %p1139_p3 }
 0x1e1   : > { %v1766_v62 = vpop.permute.xlu1 %291  ;;  %v1768_v11 = vpop.permute.xlu0 %437 }
 0x1e2   : > { %v296_v5 = vsel %vm1904_vm15, %v1766_v62, 0.0  ;;  %v443_v0 = vsel %vm1904_vm15, %v1768_v11, 0.0  ;;  %v2195_v62 = vstv %s1499_s8  ;;  %s798_s8 = sadd.f32 %s2014_s25, %s2012_s15 }
 0x1e3   : > { %v298_v41 = vmul.f32 %v2195_v62, %v295_v20  ;;  %v2196_v58 = vmov %v2195_v62  ;;  %v446_v39 = vmul.f32 %v2197_v54, %v443_v0  ;;  %v2206_v62 = vmov %v2203_v46 }
 0x1e4   : > { %v299_v57 = vmul.f32 %v2196_v58, %v296_v5  ;;  %v2208_v58 = vstv %s1611_s28  ;;  %s1235_s28 = smov [#allocation10]  }
 0x1e5   : > { %v1795_v26 = vpop.permute.xlu1 %439  ;;  %v1797_v23 = vpop.permute.xlu0 %583  ;;  %v300_v3 = vadd.f32 %v298_v41, %v272_v1  ;;  %v448_v5 = vadd.f32 %v446_v39, %v421_v28  ;;  %s1141_s2 = sshll.u32 %s1235_s28, 4  ;;  %s1142_s2 = int_to_ptr.vmem [resolvable:$false] %s1141_s2 }
 0x1e6   : > { %v444_v59 = vsel %vm1904_vm15, %v1795_v26, 0.0  ;;  %v589_v11 = vsel %vm1904_vm15, %v1797_v23, 0.0  ;;  %v301_v1 = vadd.f32 %v299_v57, %v273_v22  ;;  %s1143_s19 = scalar_lea.vmem %s1142_s2, 2048  ;;  %p1144_p12 = scmp.lt.s32.totalorder %s2098_s9, %s1142_s2 }
 0x1e7   : > { %v447_v8 = vmul.f32 %v2200_v34, %v444_v59  ;;  %v592_v9 = vmul.f32 %v2201_v40, %v589_v11  ;;  %v2207_v59 = vstv %s1513_s30  ;;  %p1145_p5 = scmp.lt.s32.totalorder %s1143_s19, %s1137_s7 }
 0x1e9   : > { %v1825_v32 = vpop.permute.xlu1 %585  ;;  %v1827_v27 = vpop.permute.xlu0 %729  ;;  %p1146_p8 = por %p1145_p5, %p1144_p12 }
 0x1ea   : > { %v590_v24 = vsel %vm1904_vm15, %v1825_v32, 0.0 }
 0x1eb   : > { %p1147_p11 = pnand %p1146_p8, %p1140_p6 }
 0x1ed   : > { %v1856_v47 = vpop.permute.xlu1 %731  ;;  %v318_v6 = vpop.permute.xlu0 %317 }
 0x1ee   : > { %v323_v50 = vsel %vm209_vm14, %v318_v6, 0.0  ;;  %v422_v6 = vadd.f32 %v420_v31, %v1549_v60  ;;  %v713_v60 = vadd.f32 %v711_v16, %v1570_v15 }
 0x1ef   : > { %v326_v26 = vmul.f32 %v2198_v45, %v323_v50  ;;  %v2205_v50 = vmov %v2201_v40  ;;  %v736_v40 = vsel %vm1904_vm15, %v1856_v47, 0.0 }
 0x1f0   : > { %v449_v0 = vadd.f32 %v447_v8, %v422_v6  ;;  %v593_v56 = vmul.f32 %v2205_v50, %v590_v24 }
 0x1f1   : > { %v320_v29 = vpop.permute.xlu1 %319  ;;  %v465_v25 = vpop.permute.xlu0 %464 }
 0x1f2   : > { %v324_v55 = vsel %vm209_vm14, %v320_v29, 0.0  ;;  %v470_v23 = vsel %vm209_vm14, %v465_v25, 0.0  ;;  %v735_v29 = vsel %vm1904_vm15, %v1827_v27, 0.0  ;;  %v328_v27 = vadd.f32 %v326_v26, %v300_v3 }
 0x1f3   : > { %v327_v43 = vmul.f32 %v2202_v51, %v324_v55  ;;  %v473_v42 = vmul.f32 %v2203_v46, %v470_v23  ;;  %v738_v11 = vmul.f32 %v2207_v59, %v735_v29  ;;  %v2209_v55 = vmov %v2204_v37 }
 0x1f4   : > { %v595_v8 = vadd.f32 %v593_v56, %v568_v38  ;;  %v2211_v3 = vmov %v2208_v58 }
 0x1f5   : > { %v467_v7 = vpop.permute.xlu1 %466  ;;  %v611_v10 = vpop.permute.xlu0 %610  ;;  %v329_v39 = vadd.f32 %v327_v43, %v301_v1  ;;  %v475_v6 = vadd.f32 %v473_v42, %v448_v5  ;;  %v2212_v43 = vstv %s1613_s29  ;;  %v2215_v5 = vld [vmem:[#allocation20_spill] sm:$0xff]  ;;  %s983_s29 = sshll.u32 %s1213_s12, 10  ;;  %s808_s12 = scalar_lea.sflag [#allocation9], %s1392_s27 }
 0x1f6   : > { %v471_v15 = vsel %vm209_vm14, %v467_v7, 0.0  ;;  %v616_v20 = vsel %vm209_vm14, %v611_v10, 0.0  ;;  %v594_v7 = vadd.f32 %v592_v9, %v567_v14  ;;  %s2096_s6 = scalar_lea.hbm %s2151_s5, %s983_s29 }
 0x1f7   : > { %v474_v41 = vmul.f32 %v2206_v62, %v471_v15  ;;  %v619_v10 = vmul.f32 %v2208_v58, %v616_v20 }
 0x1f9   : > { %v613_v21 = vpop.permute.xlu1 %612  ;;  %v757_v35 = vpop.permute.xlu0 %756  ;;  %v476_v9 = vadd.f32 %v474_v41, %v449_v0  ;;  %v621_v29 = vadd.f32 %v619_v10, %v594_v7  ;;  %v2218_v10 = vmov %v2212_v43 }
 0x1fa   : > { %v617_v54 = vsel %vm209_vm14, %v613_v21, 0.0  ;;  %v762_v21 = vsel %vm209_vm14, %v757_v35, 0.0 }
 0x1fb   : > { %v620_v24 = vmul.f32 %v2211_v3, %v617_v54  ;;  %v765_v46 = vmul.f32 %v2212_v43, %v762_v21 }
 0x1fd   : > { %v759_v25 = vpop.permute.xlu1 %758  ;;  %v346_v31 = vpop.permute.xlu0 %345  ;;  %v622_v7 = vadd.f32 %v620_v24, %v595_v8 }
 0x1fe   : > { %v351_v32 = vsel %vm218_vm0, %v346_v31, 0.0  ;;  %v763_v38 = vsel %vm209_vm14, %v759_v25, 0.0 }
 0x1ff   : > { %v354_v16 = vmul.f32 %v2204_v37, %v351_v32  ;;  %v2214_v32 = vmov %v2210_v61  ;;  %v740_v37 = vadd.f32 %v738_v11, %v713_v60  ;;  %v766_v54 = vmul.f32 %v2218_v10, %v763_v38 }
 0x201   : > { %v356_v22 = vadd.f32 %v354_v16, %v328_v27  ;;  %v348_v28 = vpop.permute.xlu1 %347  ;;  %v492_v57 = vpop.permute.xlu0 %491  ;;  %v714_v27 = vadd.f32 %v712_v63, %v2215_v5  ;;  %v2216_v16 = vmov %v2207_v59  ;;  %v767_v58 = vadd.f32 %v765_v46, %v740_v37 }
 0x202   : > { %v352_v14 = vsel %vm218_vm0, %v348_v28, 0.0  ;;  %v497_v45 = vsel %vm218_vm0, %v492_v57, 0.0  ;;  %v739_v0 = vmul.f32 %v2216_v16, %v736_v40 }
 0x203   : > { %v361_v26 = vadd.f32 %v356_v22, %v1718_v52  ;;  %v355_v23 = vmul.f32 %v2209_v55, %v352_v14  ;;  %v500_v34 = vmul.f32 %v2210_v61, %v497_v45 }
 0x204   : > { %v741_v57 = vadd.f32 %v739_v0, %v714_v27 }
 0x205   : > { %v364_v35 = vadd.f32 %v1739_v2, %v361_v26  ;;  %v357_v15 = vadd.f32 %v355_v23, %v329_v39  ;;  %v502_v52 = vadd.f32 %v500_v34, %v475_v6  ;;  %v494_v31 = vpop.permute.xlu1 %493  ;;  %v638_v51 = vpop.permute.xlu0 %637 }
 0x206   : > { %v498_v47 = vsel %vm218_vm0, %v494_v31, 0.0  ;;  %v643_v33 = vsel %vm218_vm0, %v638_v51, 0.0  ;;  %v768_v26 = vadd.f32 %v766_v54, %v741_v57 }
 0x207   : > { %367 = vst.msk [vmem:[%s2039_s1] sm:$0xff] %vm366_vm1, %v364_v35  ;;  %v362_v42 = vadd.f32 %v357_v15, %v1741_v13  ;;  %v507_v20 = vadd.f32 %v502_v52, %v1757_v30  ;;  %v501_v25 = vmul.f32 %v2214_v32, %v498_v47  ;;  %v646_v1 = vmul.f32 %v645_v18, %v643_v33  ;;  %v2217_v13 = vld [vmem:[#allocation21_spill] sm:$0xff] }
 0x209   : > { %v365_v50 = vadd.f32 %v1739_v2, %v362_v42  ;;  %v510_v30 = vadd.f32 %v2217_v13, %v507_v20  ;;  %v503_v56 = vadd.f32 %v501_v25, %v476_v9  ;;  %v648_v62 = vadd.f32 %v646_v1, %v621_v29  ;;  %v640_v41 = vpop.permute.xlu1 %639  ;;  %v784_v59 = vpop.permute.xlu0 %783 }
 0x20a   : > { %v644_v63 = vsel %vm218_vm0, %v640_v41, 0.0  ;;  %v789_v60 = vsel %vm218_vm0, %v784_v59, 0.0 }
 0x20b   : > { %368 = vst.msk [vmem:[%s2039_s1 + $0x8] sm:$0xff] %vm366_vm1, %v365_v50  ;;  %943 = vst.msk [vmem:[%s2039_s1 + $0x10] sm:$0xff] %vm366_vm1, %v510_v30  ;;  %v508_v2 = vadd.f32 %v503_v56, %v1860_v17  ;;  %v653_v11 = vadd.f32 %v648_v62, %v1911_v4  ;;  %v647_v22 = vmul.f32 %v645_v18, %v644_v63  ;;  %v801_v17 = vstv %s798_s8 }
 0x20c   : > { %v792_v28 = vmul.f32 %v791_v53, %v789_v60  ;;  %v781_v4 = vadd.f32 %v1923_v19, %v1939_v49 }
 0x20d   : > { %v511_v39 = vadd.f32 %v2217_v13, %v508_v2  ;;  %v656_v6 = vadd.f32 %v1913_v44, %v653_v11  ;;  %v649_v14 = vadd.f32 %v647_v22, %v622_v7  ;;  %v786_v21 = vpop.permute.xlu1 %785 }
 0x20e   : > { %v794_v45 = vadd.f32 %v792_v28, %v767_v58  ;;  %v790_v18 = vsel %vm218_vm0, %v786_v21, 0.0 }
 0x20f   : > { %944 = vst.msk [vmem:[%s2039_s1 + $0x18] sm:$0xff] %vm366_vm1, %v511_v39  ;;  %959 = vst.msk [vmem:[%s2039_s1 + $0x20] sm:$0xff] %vm366_vm1, %v656_v6  ;;  %v654_v55 = vadd.f32 %v649_v14, %v1915_v12  ;;  %v793_v61 = vmul.f32 %v791_v53, %v790_v18 }
 0x210   : > { %v799_v23 = vadd.f32 %v794_v45, %v1920_v36 }
 0x211   : > { %v657_v34 = vadd.f32 %v1913_v44, %v654_v55  ;;  %v795_v49 = vadd.f32 %v793_v61, %v768_v26 }
 0x212   : > { %v802_v19 = vadd.f32 %v801_v17, %v799_v23 }
 0x213   : > { %960 = vst.msk [vmem:[%s2039_s1 + $0x28] sm:$0xff] %vm366_vm1, %v657_v34  ;;  %v800_v48 = vadd.f32 %v795_v49, %v781_v4 }
 0x214   : > { %975 = vst.msk [vmem:[%s2039_s1 + $0x30] sm:$0xff] %vm366_vm1, %v802_v19 }
 0x215   : > { %v803_v44 = vadd.f32 %v801_v17, %v800_v48 }
 0x217   : > { %976 = vst.msk [vmem:[%s2039_s1 + $0x38] sm:$0xff] %vm366_vm1, %v803_v44 }
 0x218   : > { %1150 = shalt.err (!%p1147_p11)
}
 0x219   : > { %s1151_s16 = scalar_lea.hbm %s2096_s6, 1024  ;;  %s1155_s10 = scalar_lea.hbm %s2151_s5, 2048 }
 0x21a   : > { %p1152_p10 = scmp.ne.s32.totalorder %s2096_s6, %s1151_s16  ;;  %p1156_p4 = scmp.lt.u32.totalorder %s2096_s6, %s2151_s5 }
 0x21b   : > { %p1157_p7 = scmp.lt.u32.totalorder %s1155_s10, %s1151_s16  ;;  %p1159_p0 = scmp.lt.u32.totalorder %s1151_s16, %s2096_s6 }
 0x21c   : > { %p1153_p13 = pnand %p1152_p10, %p2219_p1 }
 0x21d   : > { %p1158_p9 = por %p1157_p7, %p1156_p4 }
 0x21e   : > { %p1154_p2 = pneg %p1153_p13 }
 0x21f   : > { %p1160_p3 = por %p1159_p0, %p1158_p9 }
 0x221   : > { %p1161_p6 = pnand %p1160_p3, %p1154_p2 }
 0x223   : > { %1164 = shalt.err (!%p1161_p6)
}
 0x224   : > { %s1236_s17 = smov 128   ;;  %s1237_s23 = smov 8  }
 0x225   : > { %986 = dma.vmem_to_hbm [thread:$0]  (%p2219_p1), %s2098_s9, 1024, %s2096_s6, %s808_s12, %s1236_s17, %s1236_s17, %s1237_s23  }
 0x226 PF: > { %s2220_s18 = sld [smem:[#allocation17_spill]]  ;;  %s839_s20 = sand.u32 1, %s1201_s3  }
 0x227   : > { %p2221_p12 = scmp.ne.s32.totalorder %s2176_s24, 0  ;;  %s840_s0 = scalar_lea.sflag [#allocation9], %s839_s20 }
 0x22c   : > { %p2222_p5 = scmp.ge.s32.totalorder %s2220_s18, 2 }
 0x22e   : > { %p993_p8 = pnand %p2222_p5, %p2221_p12 }
 0x230   : > { %1196 = dma.done.wait (!%p993_p8), %s840_s0, 1024  }
 0x231   : > { %1198 = vsyncadd (!%p993_p8), %s840_s0, 4294966272  ;;  %s39_s14 = sadd.s32 1, %s2220_s18   ;;  %s2223_s3 = sld [smem:[#allocation14_spill]] }
 0x232   : > { %p36_p11 = scmp.ge.s32.totalorder %s39_s14, 4   ;;  %s2224_s10 = sld [smem:[#allocation15_spill]] }
 0x233   : > { %s2225_s11 = sld [smem:[#allocation19_spill]]  ;;  %s2226_s12 = sld [smem:[#allocation16_spill]] }
 0x234   : > { %s2227_s13 = sld [smem:[#allocation18_spill]]  ;;  %38 = sbr.rel (!%p36_p11) target bundleno = 53 (0x35), region = 75 }
 0x23b   :  { %845 = vsyncpa [#allocation8], 1 }
 0x23c   :  { %847 = vsyncpa [#allocation8 + $0x1], 1 }
 0x23d   :  { %848 = vsyncpa [#allocation9], 1 }
 0x23e   :  { %850 = vsyncpa [#allocation9 + $0x1], 1 }

</bundles_post_ra>
